<compile_context>
chip_gen: v6e
topology: v6e:2x2x1
jax: 0.10.0
libtpu: 0.0.40
codegen_flags: <defaults>
</compile_context>

<pallas_src>
import functools

import jax
import jax.numpy as jnp
from jax import lax
from jax.experimental import pallas as pl
from jax.experimental.pallas import tpu as pltpu


def _supports_bf16_eup():
    """bf16 transcendentals only pay off on v6e / v7x (v5e and older lack a bf16 EUP)."""
    try:
        kind = jax.devices()[0].device_kind.lower()
    except Exception:
        return False
    return not any(v in kind for v in ("v2", "v3", "v4", "v5"))


def _ntxent_kernel(zr_ref, zc_ref, pos_ref, out_ref, l_acc, *,
                   inv_tau, use_bf16_exp):
    """grid = (row_tiles, col_tiles); the column axis is the (innermost) reduction axis."""
    j = pl.program_id(1)
    n_j = pl.num_programs(1)

    @pl.when(j == 0)
    def _init():
        l_acc[...] = jnp.zeros_like(l_acc)

    a = zr_ref[...]                       # (tm, Zp) bf16, rows = l2-normalized * sqrt(1/tau)
    b = zc_ref[...]                       # (tn, Zp) bf16 (resident full array when n_ct == 1)

    # s[r, c] = <z_r, z_c> / tau   (bf16 MXU operands, f32 accumulation).
    s = lax.dot_general(a, b, dimension_numbers=(((1,), (1,)), ((), ())),
                        preferred_element_type=jnp.float32)          # (tm, tn)

    # Static shift: rows are unit vectors scaled by sqrt(1/tau), so s <= 1/tau (+ bf16 slop).
    if use_bf16_exp:
        # v6e/v7x: bf16 EUP (~2x f32 throughput); row-sum offloaded to the idle MXU.
        p = jnp.exp((s - inv_tau).astype(jnp.bfloat16))               # (tm, tn) bf16
        ones = jnp.ones((p.shape[1], 128), dtype=jnp.bfloat16)
        sums = lax.dot_general(p, ones, dimension_numbers=(((1,), (0,)), ((), ())),
                               preferred_element_type=jnp.float32)    # (tm, 128) f32
        l_acc[...] += sums[:, 0:1]
    else:
        # v5e: no bf16 EUP -> keep the exp and the reduction in f32.
        p = jnp.exp(s - inv_tau)
        l_acc[...] += jnp.sum(p, axis=1, keepdims=True)

    @pl.when(j == n_j - 1)
    def _finalize():
        a32 = a.astype(jnp.float32)
        self_logit = jnp.sum(a32 * a32, axis=1, keepdims=True)        # s_ii (~ 1/tau)
        den = l_acc[...] - jnp.exp(self_logit - inv_tau)              # row sum minus self
        # loss_i = m + log(sum_{j != i} exp(s_ij - m)) - s_{i, i^1}
        out_ref[...] = inv_tau + jnp.log(den) - pos_ref[...]


def _pick_row_tile(two_n):
    for t in (256, 128, 64, 32, 16, 8):
        if t <= two_n and two_n % t == 0:
            return t
    return two_n            # tiny / awkward sizes: one full-height tile


_V7X_SAFE_VMEM = 40 * 1024 * 1024     # stay well under 64 MiB per TensorCore (v7x)


def _vmem_estimate(tm, tn, zp):
    a_buf = 2 * tm * zp * 2           # double-buffered bf16 row tiles
    b_buf = 2 * tn * zp * 2           # double-buffered bf16 column tiles
    inter = 12 * tm * tn              # s (f32) + shifted copy + exp result (worst case)
    ones = 256 * tn                   # bf16 ones operand for the MXU row-sum
    return a_buf + b_buf + inter + ones + (1 << 20)


def _vmem_limit(tm, tn, zp):
    return int(min(max(_vmem_estimate(tm, tn, zp) * 5 // 4, 32 * 1024 * 1024),
                   56 * 1024 * 1024))


def _pick_col_tile(two_n, tm, zp):
    if _vmem_estimate(tm, two_n, zp) <= _V7X_SAFE_VMEM:
        return two_n                                   # fully resident column operand
    for cand in (8192, 4096, 2048, 1024, 512, 256, 128):
        if cand < two_n and two_n % cand == 0 and \
           _vmem_estimate(tm, cand, zp) <= _V7X_SAFE_VMEM:
            return cand                                # streaming column tiles
    return two_n                                       # awkward huge shapes: best effort


def nt_xent_loss(z, tau=0.5, *, use_bf16_exp=None, col_tile=None):
    """NT-Xent loss. z: (2N, Z); rows (2k, 2k+1) form a positive pair. Returns scalar f32."""
    two_n, zdim = z.shape
    assert two_n % 2 == 0, "NT-Xent expects an even number of rows (2N)."
    if use_bf16_exp is None:
        use_bf16_exp = _supports_bf16_eup()

    # ---- hoisted preprocessing (done once, not once per tile pair) ----------------------
    # torch.nn.functional.normalize(z, p=2, dim=1) with eps=1e-12, with 1/sqrt(tau) folded
    # in so the in-kernel MXU output is already sim/tau; ship bf16 to halve HBM traffic.
    scale = (1.0 / float(tau)) ** 0.5
    z32 = z.astype(jnp.float32)
    norm = jnp.sqrt(jnp.sum(z32 * z32, axis=1, keepdims=True))
    zb = (z32 * (scale / jnp.maximum(norm, 1e-12))).astype(jnp.bfloat16)

    # Pad the contraction (lane) dim to a multiple of 128; zero pad changes norms/dots not at all.
    zp = max(128, ((zdim + 127) // 128) * 128)
    if zp != zdim:
        zb = jnp.pad(zb, ((0, 0), (0, zp - zdim)))

    # Positive-pair logits s_{i, i^1} = <z_i, z_{i^1}> / tau, computed once (O(2N*Z)) from
    # the same bf16 values the kernel sees (rows 2k and 2k+1 share one value, as in torch).
    zb32 = zb.astype(jnp.float32)
    pos_pairs = jnp.sum(zb32[0::2] * zb32[1::2], axis=1)          # (N,)
    pos = jnp.repeat(pos_pairs, 2)[:, None]                       # (2N, 1) f32

    # ---- tiling --------------------------------------------------------------------------
    tm = _pick_row_tile(two_n)
    if col_tile is not None:
        assert two_n % col_tile == 0
        tn = col_tile
    else:
        tn = _pick_col_tile(two_n, tm, zp)
    n_rt, n_ct = two_n // tm, two_n // tn

    kernel = functools.partial(_ntxent_kernel, inv_tau=float(1.0 / tau),
                               use_bf16_exp=bool(use_bf16_exp))
    per_row_loss = pl.pallas_call(
        kernel,
        out_shape=jax.ShapeDtypeStruct((two_n, 1), jnp.float32),
        grid_spec=pltpu.PrefetchScalarGridSpec(
            num_scalar_prefetch=0,
            grid=(n_rt, n_ct),                                     # reduction axis innermost
            in_specs=[
                pl.BlockSpec((tm, zp), lambda i, j: (i, 0)),       # row tile of z
                pl.BlockSpec((tn, zp), lambda i, j: (j, 0)),       # column tile (resident if n_ct==1)
                pl.BlockSpec((tm, 1), lambda i, j: (i, 0)),        # positive-pair logits
            ],
            out_specs=pl.BlockSpec((tm, 1), lambda i, j: (i, 0)),
            scratch_shapes=[pltpu.VMEM((tm, 1), jnp.float32)],     # l_acc
        ),
        compiler_params=pltpu.CompilerParams(
            dimension_semantics=("parallel", "arbitrary"),
            vmem_limit_bytes=_vmem_limit(tm, tn, zp),
        ),
        cost_estimate=pl.CostEstimate(
            flops=2 * two_n * two_n * zp,
            transcendentals=two_n * two_n + two_n,
            bytes_accessed=(two_n * zp * 2                                   # row operand (once)
                            + (n_rt if n_ct > 1 else 1) * two_n * zp * 2     # column operand
                            + 2 * two_n * 4),                                # pos in + losses out
        ),
    )(zb, zb, pos)
    return jnp.mean(per_row_loss)


def _reference(z, tau):
    # pure-JAX f32 reference mirroring the torch forward exactly
    z = z.astype(jnp.float32)
    zn = z / jnp.maximum(jnp.linalg.norm(z, axis=1, keepdims=True), 1e-12)
    mat = jnp.exp(zn @ zn.T / tau)
    numerator = jnp.repeat(jnp.diagonal(mat, offset=1)[::2], 2)
    denominator = mat.sum(-1) - jnp.diag(mat)
    return jnp.mean(-jnp.log(numerator / denominator))


if __name__ == "__main__":
    tau = 0.5
    key = jax.random.PRNGKey(0)
    k1, k2 = jax.random.split(key)

    # Case 1: 2N = 512 rows, Z = 64. Resident column operand: grid = (2, 1).
    z_large = jax.random.normal(k1, (512, 64), dtype=jnp.float32)
    loss1 = jax.block_until_ready(nt_xent_loss(z_large, tau=tau))
    ref1 = _reference(z_large, tau)
    assert jnp.isfinite(loss1), "case 1: loss is not finite"
    assert jnp.allclose(loss1, ref1, rtol=2e-2, atol=2e-2), (loss1, ref1)

    # Case 2: tiny (2N = 8, Z = 32): single full-size tile.
    z_small = jax.random.normal(k2, (8, 32), dtype=jnp.float32)
    loss2 = jax.block_until_ready(nt_xent_loss(z_small, tau=tau))
    ref2 = _reference(z_small, tau)
    assert jnp.isfinite(loss2), "case 2: loss is not finite"
    assert jnp.allclose(loss2, ref2, rtol=2e-2, atol=2e-2), (loss2, ref2)

    # Case 3: force the streaming column-tile path (n_ct > 1) and the other exp dtype so
    # both accumulation paths and both EUP paths compile and agree with the reference.
    other_exp = not _supports_bf16_eup()
    loss3 = jax.block_until_ready(
        nt_xent_loss(z_large, tau=tau, use_bf16_exp=other_exp, col_tile=128))
    assert jnp.isfinite(loss3), "case 3: loss is not finite"
    assert jnp.allclose(loss3, ref1, rtol=2e-2, atol=2e-2), (loss3, ref1)

    print("KERNEL_OK")
</pallas_src>

<mosaic_0001>
module attributes {stable_mosaic.version = 11 : i64} {
  func.func @_ntxent_kernel(%arg0: i32, %arg1: i32, %arg2: memref<256x128xbf16, #tpu.memory_space<vmem>>, %arg3: memref<512x128xbf16, #tpu.memory_space<vmem>>, %arg4: memref<256x1xf32, #tpu.memory_space<vmem>>, %arg5: memref<256x1xf32, #tpu.memory_space<vmem>>, %arg6: memref<256x1xf32, #tpu.memory_space<vmem>>) attributes {dimension_semantics = [#tpu.dimension_semantics<parallel>, #tpu.dimension_semantics<arbitrary>], iteration_bounds = array<i64: 2, 1>, scalar_prefetch = 0 : i64, scratch_operands = 1 : i64, tpu.core_type = #tpu.core_type<tc>, window_params = [{transform_indices = @transform_0, window_bounds = array<i64: 256, 128>}, {transform_indices = @transform_1, window_bounds = array<i64: 512, 128>}, {transform_indices = @transform_2, window_bounds = array<i64: 256, 1>}, {transform_indices = @transform_3, window_bounds = array<i64: 256, 1>}]} {
    %c0_i32 = arith.constant 0 : i32
    %0 = arith.cmpi eq, %arg1, %c0_i32 : i32
    %1 = arith.extui %0 : i1 to i32
    %c0_i32_0 = arith.constant 0 : i32
    %2 = arith.cmpi ne, %1, %c0_i32_0 : i32
    scf.if %2 {
      %cst_13 = arith.constant 0.000000e+00 : f32
      %19 = vector.broadcast %cst_13 : f32 to vector<256x1xf32>
      %c0_14 = arith.constant 0 : index
      %c0_15 = arith.constant 0 : index
      %20 = vector.load %arg6[%c0_14, %c0_15] : memref<256x1xf32, #tpu.memory_space<vmem>>, vector<256x1xf32>
      tpu.vector_store %arg6[%c0_14, %c0_15], %19 {strides = array<i32>} : memref<256x1xf32, #tpu.memory_space<vmem>>, vector<256x1xf32>,
    } else {
    }
    %c0 = arith.constant 0 : index
    %c0_1 = arith.constant 0 : index
    %3 = vector.load %arg2[%c0, %c0_1] : memref<256x128xbf16, #tpu.memory_space<vmem>>, vector<256x128xbf16>
    %c0_2 = arith.constant 0 : index
    %c0_3 = arith.constant 0 : index
    %4 = vector.load %arg3[%c0_2, %c0_3] : memref<512x128xbf16, #tpu.memory_space<vmem>>, vector<512x128xbf16>
    %cst = arith.constant dense<0.000000e+00> : vector<256x512xf32>
    %5 = tpu.matmul %3, %4, %cst {dimension_numbers = #tpu.dot_dimension_numbers<[1], [1], [0], [0], [0, 0, 1, 0], [], []>} : vector<256x128xbf16>, vector<512x128xbf16>, vector<256x512xf32> -> vector<256x512xf32>
    %cst_4 = arith.constant 2.000000e+00 : f32
    %6 = vector.broadcast %cst_4 : f32 to vector<256x512xf32>
    %7 = arith.subf %5, %6 : vector<256x512xf32>
    %8 = arith.truncf %7 : vector<256x512xf32> to vector<256x512xbf16>
    %9 = math.exp %8 : vector<256x512xbf16>
    %cst_5 = arith.constant 1.000000e+00 : bf16
    %10 = vector.broadcast %cst_5 : bf16 to vector<512x128xbf16>
    %cst_6 = arith.constant dense<0.000000e+00> : vector<256x128xf32>
    %11 = tpu.matmul %9, %10, %cst_6 {dimension_numbers = #tpu.dot_dimension_numbers<[1], [0], [0], [1], [0, 0, 1, 1], [], []>} : vector<256x512xbf16>, vector<512x128xbf16>, vector<256x128xf32> -> vector<256x128xf32>
    %c0_7 = arith.constant 0 : index
    %c0_8 = arith.constant 0 : index
    %12 = vector.load %arg6[%c0_7, %c0_8] : memref<256x1xf32, #tpu.memory_space<vmem>>, vector<256x1xf32>
    %13 = vector.extract_strided_slice %11 {offsets = [0, 0], sizes = [256, 1], strides = [1, 1]} : vector<256x128xf32> to vector<256x1xf32>
    %14 = arith.addf %12, %13 : vector<256x1xf32>
    %c0_9 = arith.constant 0 : index
    %c0_10 = arith.constant 0 : index
    %15 = vector.load %arg6[%c0_9, %c0_10] : memref<256x1xf32, #tpu.memory_space<vmem>>, vector<256x1xf32>
    tpu.vector_store %arg6[%c0_9, %c0_10], %14 {strides = array<i32>} : memref<256x1xf32, #tpu.memory_space<vmem>>, vector<256x1xf32>,
    %c0_i32_11 = arith.constant 0 : i32
    %16 = arith.cmpi eq, %arg1, %c0_i32_11 : i32
    %17 = arith.extui %16 : i1 to i32
    %c0_i32_12 = arith.constant 0 : i32
    %18 = arith.cmpi ne, %17, %c0_i32_12 : i32
    scf.if %18 {
      %19 = arith.extf %3 : vector<256x128xbf16> to vector<256x128xf32>
      %20 = arith.mulf %19, %19 : vector<256x128xf32>
      %cst_13 = arith.constant dense<0.000000e+00> : vector<256xf32>
      %21 = vector.multi_reduction <add>, %20, %cst_13 [1] : vector<256x128xf32> to vector<256xf32>
      %22 = vector.shape_cast %21 : vector<256xf32> to vector<256x1xf32>
      %c0_14 = arith.constant 0 : index
      %c0_15 = arith.constant 0 : index
      %23 = vector.load %arg6[%c0_14, %c0_15] : memref<256x1xf32, #tpu.memory_space<vmem>>, vector<256x1xf32>
      %cst_16 = arith.constant 2.000000e+00 : f32
      %24 = vector.broadcast %cst_16 : f32 to vector<256x1xf32>
      %25 = arith.subf %22, %24 : vector<256x1xf32>
      %26 = math.exp %25 : vector<256x1xf32>
      %27 = arith.subf %23, %26 : vector<256x1xf32>
      %28 = math.log %27 : vector<256x1xf32>
      %cst_17 = arith.constant 2.000000e+00 : f32
      %29 = vector.broadcast %cst_17 : f32 to vector<256x1xf32>
      %30 = arith.addf %29, %28 : vector<256x1xf32>
      %c0_18 = arith.constant 0 : index
      %c0_19 = arith.constant 0 : index
      %31 = vector.load %arg4[%c0_18, %c0_19] : memref<256x1xf32, #tpu.memory_space<vmem>>, vector<256x1xf32>
      %32 = arith.subf %30, %31 : vector<256x1xf32>
      %c0_20 = arith.constant 0 : index
      %c0_21 = arith.constant 0 : index
      %33 = vector.load %arg5[%c0_20, %c0_21] : memref<256x1xf32, #tpu.memory_space<vmem>>, vector<256x1xf32>
      tpu.vector_store %arg5[%c0_20, %c0_21], %32 {strides = array<i32>} : memref<256x1xf32, #tpu.memory_space<vmem>>, vector<256x1xf32>,
    } else {
    }
    return
  }
  func.func @transform_0(%arg0: i32, %arg1: i32) -> (i32, i32) {
    %c0_i32 = arith.constant 0 : i32
    %c0_i32_0 = arith.constant 0 : i32
    return %arg0, %c0_i32 : i32, i32
  }
  func.func @transform_1(%arg0: i32, %arg1: i32) -> (i32, i32) {
    %c0_i32 = arith.constant 0 : i32
    %c0_i32_0 = arith.constant 0 : i32
    return %arg1, %c0_i32 : i32, i32
  }
  func.func @transform_2(%arg0: i32, %arg1: i32) -> (i32, i32) {
    %c0_i32 = arith.constant 0 : i32
    %c0_i32_0 = arith.constant 0 : i32
    return %arg0, %c0_i32 : i32, i32
  }
  func.func @transform_3(%arg0: i32, %arg1: i32) -> (i32, i32) {
    %c0_i32 = arith.constant 0 : i32
    %c0_i32_0 = arith.constant 0 : i32
    return %arg0, %c0_i32 : i32, i32
  }
}

</mosaic_0001>

<bundles_post_ra>
// kernel: tpu_custom_call.1
= control target key start
LH: loop header
LB: loop body
LE: loop exit
PB: predicated region body
PF: predicated region fallthrough
CT: control target
= control target key end

     0   :  { %s3351_s12 = smov 0   ;;  %s3353_s13 = smov 0   ;;  %s3804_s0 = inlined_call_operand.vmem [shape: bf16[512,128], index: 0, kind: input, shape index: {}]   ;;  %s3805_s1 = inlined_call_operand.vmem [shape: bf16[512,128], index: 1, kind: input, shape index: {}]   ;;  %s3806_s2 = inlined_call_operand.vmem [shape: f32[512,1], index: 2, kind: input, shape index: {}]   ;;  %s3807_s3 = inlined_call_operand.vmem [shape: f32[512,1], index: 3, kind: output, shape index: {}]  }
   0x1   :  { %s3355_s14 = smov 0  }
   0x2 LB: > { %s25_s15 = sadd.s32 1, %s3323_s13  ;;  %p2422_p0 = scmp.ge.s32.totalorder %s3327_s14, 1  ;;  %s3327_s14 = sphi %s3355_s14, %s13_s14   ;;  %s3323_s13 = sphi %s3353_s13, %s3809_s13   ;;  %s3319_s12 = sphi %s3351_s12, %s3808_s12  }
   0x3   : > { %p27_p1 = scmp.ge.s32.totalorder %s25_s15, 2  ;;  %p172_p2 = scmp.lt.s32.totalorder %s3327_s14, 3 }
   0x5   : > { %s3811_s15 = smov (%p27_p1, %s25_s15), 0  ;;  %p173_p3 = pnand %p2422_p0, %p172_p2 }
   0x6   : > { %s2423_s11 = sshll.u32 (!%p173_p3), %s3319_s12, 5 }
   0x7   : > { %176 = sbr.rel (%p173_p3) target bundleno = 656 (0x290), region = 32  ;;  %p207_p4 = scmp.lt.s32.totalorder (!%p173_p3), %s2423_s11, 63 }
   0xc   : > { %v2985_v0 = vld [vmem:[%s3805_s1 + $0x78] sm:$0xff]   ;;  %v2989_v4 = vld [vmem:[%s3805_s1 + $0x70] sm:$0xff]   ;;  %v2993_v8 = vld [vmem:[%s3805_s1 + $0x68] sm:$0xff]   ;;  %s3813_s11 = smov (!%p207_p4, %s2423_s11), 63  ;;  %v3329_v34 = vmov 1065369472  }
   0xd   : > { %v2986_v1 = vld [vmem:[%s3805_s1 + $0xf8] sm:$0xff]   ;;  %2639 = vmatprep.subr.bf16.mxu0 %v2985_v0  ;;  %v2990_v5 = vld [vmem:[%s3805_s1 + $0xf0] sm:$0xff]   ;;  %v2994_v9 = vld [vmem:[%s3805_s1 + $0xe8] sm:$0xff]   ;;  %s2424_s29 = sshll.u32 %s3813_s11, 2  ;;  %vm236_vm0 = vcmask 7168  }
   0xe   : > { %v2987_v2 = vld [vmem:[%s3805_s1 + $0x38] sm:$0xff]   ;;  %2687 = vmatprep.subr.bf16.mxu1 %v2986_v1  ;;  %v2991_v6 = vld [vmem:[%s3805_s1 + $0x30] sm:$0xff]   ;;  %v2995_v10 = vld [vmem:[%s3805_s1 + $0x28] sm:$0xff]   ;;  %s3432_s5 = scalar_lea.vmem %s3804_s0, %s2424_s29 }
   0xf   : > { %v2988_v3 = vld [vmem:[%s3805_s1 + $0xb8] sm:$0xff]   ;;  %2640 = vmatpush3.bf16.xpose.msra.mxu0 %v2987_v2  ;;  %v2992_v7 = vld [vmem:[%s3805_s1 + $0xb0] sm:$0xff]   ;;  %v2996_v11 = vld [vmem:[%s3805_s1 + $0xa8] sm:$0xff]  }
  0x10   : > { %2688 = vmatpush3.bf16.xpose.msra.mxu1 %v2988_v3  ;;  %2641 = vmatprep.subr.bf16.mxu0 %v2989_v4  ;;  %v2997_v12 = vld [vmem:[%s3805_s1 + $0x60] sm:$0xff]   ;;  %v3001_v16 = vld [vmem:[%s3805_s1 + $0x58] sm:$0xff]   ;;  %v3005_v21 = vld [vmem:[%s3805_s1 + $0x50] sm:$0xff]  }
  0x11   : > { %2689 = vmatprep.subr.bf16.mxu1 %v2990_v5  ;;  %v2998_v13 = vld [vmem:[%s3805_s1 + $0xe0] sm:$0xff]   ;;  %v3002_v17 = vld [vmem:[%s3805_s1 + $0xd8] sm:$0xff]   ;;  %v3006_v22 = vld [vmem:[%s3805_s1 + $0xd0] sm:$0xff]  }
  0x12   : > { %v2999_v14 = vld [vmem:[%s3805_s1 + $0x20] sm:$0xff]   ;;  %v3003_v18 = vld [vmem:[%s3805_s1 + $0x18] sm:$0xff]   ;;  %v3007_v23 = vld [vmem:[%s3805_s1 + $0x10] sm:$0xff]  }
  0x13   : > { %v3000_v15 = vld [vmem:[%s3805_s1 + $0xa0] sm:$0xff]   ;;  %v3004_v20 = vld [vmem:[%s3805_s1 + $0x98] sm:$0xff]   ;;  %v3008_v24 = vld [vmem:[%s3805_s1 + $0x90] sm:$0xff]  }
  0x14   : > { %v3438_v19 = vld [vmem:[%s3432_s5] sm:$0xff]   ;;  %v3009_v25 = vld [vmem:[%s3805_s1 + $0x48] sm:$0xff]   ;;  %v3489_v35 = vld [vmem:[%s3432_s5 + $0x10] sm:$0xff]  }
  0x15   : > { %2655 = vmatprep.mubr.bf16.mxu0 %v3438_v19  ;;  %2703 = vmatprep.mubr.bf16.mxu1 %v3438_v19  ;;  %v3010_v26 = vld [vmem:[%s3805_s1 + $0xc8] sm:$0xff]   ;;  %v3013_v29 = vld [vmem:[%s3805_s1 + $0x40] sm:$0xff]   ;;  %v3496_v36 = vld [vmem:[%s3432_s5 + $0x18] sm:$0xff]   ;;  %v1845_v49 = vunpack.c.l.bf16 %v3438_v19  ;;  %v1846_v51 = vunpack.c.h.bf16 %v3438_v19  ;;  %v1849_v57 = vunpack.c.l.bf16 %v3489_v35  ;;  %v1850_v59 = vunpack.c.h.bf16 %v3489_v35 }
  0x16   : > { %v3011_v27 = vld [vmem:[%s3805_s1 + $0x8] sm:$0xff]   ;;  %v3014_v30 = vld [vmem:[%s3805_s1 + $0xc0] sm:$0xff]   ;;  %v3517_v39 = vld [vmem:[%s3432_s5 + $0x30] sm:$0xff]   ;;  %v1851_v61 = vunpack.c.l.bf16 %v3496_v36  ;;  %v1852_v63 = vunpack.c.h.bf16 %v3496_v36 }
  0x17   : > { %2642 = vmatpush3.bf16.xpose.msra.mxu0 %v2991_v6  ;;  %v3012_v28 = vld [vmem:[%s3805_s1 + $0x88] sm:$0xff]   ;;  %v3015_v31 = vld [vmem:[%s3805_s1] sm:$0xff]   ;;  %v3524_v40 = vld [vmem:[%s3432_s5 + $0x38] sm:$0xff]   ;;  %v1877_v50 = vmul.f32 %v1845_v49, %v1845_v49  ;;  %v1878_v52 = vmul.f32 %v1846_v51, %v1846_v51  ;;  %v1881_v58 = vmul.f32 %v1849_v57, %v1849_v57  ;;  %v1882_v60 = vmul.f32 %v1850_v59, %v1850_v59 }
  0x18   : > { %2690 = vmatpush3.bf16.xpose.msra.mxu1 %v2992_v7  ;;  %2643 = vmatprep.subr.bf16.mxu0 %v2993_v8  ;;  %v3016_v32 = vld [vmem:[%s3805_s1 + $0x80] sm:$0xff]   ;;  %v3482_v33 = vld [vmem:[%s3432_s5 + $0x8] sm:$0xff]   ;;  %v3545_v43 = vld [vmem:[%s3432_s5 + $0x50] sm:$0xff]   ;;  %v1883_v62 = vmul.f32 %v1851_v61, %v1851_v61  ;;  %v1884_v0 = vmul.f32 %v1852_v63, %v1852_v63  ;;  %v1860_v51 = vunpack.c.h.bf16 %v3524_v40 }
  0x19   : > { %2691 = vmatprep.subr.bf16.mxu1 %v2994_v9  ;;  %v3503_v37 = vld [vmem:[%s3432_s5 + $0x20] sm:$0xff]   ;;  %v3510_v38 = vld [vmem:[%s3432_s5 + $0x28] sm:$0xff]   ;;  %v3552_v44 = vld [vmem:[%s3432_s5 + $0x58] sm:$0xff]   ;;  %1909 = vadd.xlane.f32.xlu0 %v1877_v50  ;;  %v1847_v53 = vunpack.c.l.bf16 %v3482_v33  ;;  %v1848_v55 = vunpack.c.h.bf16 %v3482_v33  ;;  %v1857_v9 = vunpack.c.l.bf16 %v3517_v39 }
  0x1a   : > { %v3531_v41 = vld [vmem:[%s3432_s5 + $0x40] sm:$0xff]   ;;  %v3538_v42 = vld [vmem:[%s3432_s5 + $0x48] sm:$0xff]   ;;  %v3573_v47 = vld [vmem:[%s3432_s5 + $0x70] sm:$0xff]   ;;  %v1853_v1 = vunpack.c.l.bf16 %v3503_v37  ;;  %v1854_v3 = vunpack.c.h.bf16 %v3503_v37  ;;  %v1855_v5 = vunpack.c.l.bf16 %v3510_v38  ;;  %v1856_v7 = vunpack.c.h.bf16 %v3510_v38 }
  0x1b   : > { %v3559_v45 = vld [vmem:[%s3432_s5 + $0x60] sm:$0xff]   ;;  %v3566_v46 = vld [vmem:[%s3432_s5 + $0x68] sm:$0xff]   ;;  %v3580_v48 = vld [vmem:[%s3432_s5 + $0x78] sm:$0xff]   ;;  %v1879_v54 = vmul.f32 %v1847_v53, %v1847_v53  ;;  %v1880_v56 = vmul.f32 %v1848_v55, %v1848_v55  ;;  %v1892_v57 = vmul.f32 %v1860_v51, %v1860_v51  ;;  %v1861_v61 = vunpack.c.l.bf16 %v3531_v41  ;;  %s2426_s5 = sshll.u32 %s3813_s11, 3 }
  0x1c   : > { %v1885_v2 = vmul.f32 %v1853_v1, %v1853_v1  ;;  %v1886_v4 = vmul.f32 %v1854_v3, %v1854_v3  ;;  %v1887_v6 = vmul.f32 %v1855_v5, %v1855_v5  ;;  %v1888_v8 = vmul.f32 %v1856_v7, %v1856_v7  ;;  %s3664_s19 = scalar_lea.vmem %s3806_s2, %s2426_s5  ;;  %s3673_s12 = scalar_lea.vmem %s3807_s3, %s2426_s5 }
  0x1d   : > { %1911 = vadd.xlane.f32.xlu0 %v1878_v52  ;;  %1913 = vadd.xlane.f32.xlu1 %v1879_v54  ;;  %v1893_v5 = vmul.f32 %v1861_v61, %v1861_v61  ;;  %v1868_v61 = vunpack.c.h.bf16 %v3552_v44 }
  0x1f   : > { %2644 = vmatpush3.bf16.xpose.msra.mxu0 %v2995_v10 }
  0x20   : > { %2692 = vmatpush3.bf16.xpose.msra.mxu1 %v2996_v11  ;;  %2645 = vmatprep.subr.bf16.mxu0 %v2997_v12  ;;  %v1889_v12 = vmul.f32 %v1857_v9, %v1857_v9 }
  0x21   : > { %2693 = vmatprep.subr.bf16.mxu1 %v2998_v13  ;;  %1915 = vadd.xlane.f32.xlu1 %v1880_v56 }
  0x22   : > { %1917 = vadd.xlane.f32.xlu0 %v1881_v58 }
  0x25   : > { %1919 = vadd.xlane.f32.xlu1 %v1882_v60 }
  0x26   : > { %1921 = vadd.xlane.f32.xlu0 %v1883_v62 }
  0x27   : > { %2646 = vmatpush3.bf16.xpose.msra.mxu0 %v2999_v14 }
  0x28   : > { %2694 = vmatpush3.bf16.xpose.msra.mxu1 %v3000_v15  ;;  %2647 = vmatprep.subr.bf16.mxu0 %v3001_v16  ;;  %v1858_v15 = vunpack.c.h.bf16 %v3517_v39 }
  0x29   : > { %2695 = vmatprep.subr.bf16.mxu1 %v3002_v17  ;;  %1923 = vadd.xlane.f32.xlu1 %v1884_v0 }
  0x2a   : > { %1925 = vadd.xlane.f32.xlu0 %v1885_v2 }
  0x2d   : > { %1927 = vadd.xlane.f32.xlu1 %v1886_v4 }
  0x2e   : > { %1929 = vadd.xlane.f32.xlu0 %v1887_v6 }
  0x2f   : > { %2648 = vmatpush3.bf16.xpose.msra.mxu0 %v3003_v18 }
  0x30   : > { %2696 = vmatpush3.bf16.xpose.msra.mxu1 %v3004_v20  ;;  %2649 = vmatprep.subr.bf16.mxu0 %v3005_v21  ;;  %v1890_v20 = vmul.f32 %v1858_v15, %v1858_v15  ;;  %v1862_v15 = vunpack.c.h.bf16 %v3531_v41 }
  0x31   : > { %2697 = vmatprep.subr.bf16.mxu1 %v3006_v22  ;;  %1931 = vadd.xlane.f32.xlu1 %v1888_v8 }
  0x32   : > { %1933 = vadd.xlane.f32.xlu0 %v1889_v12 }
  0x35   : > { %1935 = vadd.xlane.f32.xlu1 %v1890_v20 }
  0x37   : > { %2650 = vmatpush3.bf16.xpose.msra.mxu0 %v3007_v23 }
  0x38   : > { %2698 = vmatpush3.bf16.xpose.msra.mxu1 %v3008_v24  ;;  %2651 = vmatprep.subr.bf16.mxu0 %v3009_v25  ;;  %v1859_v24 = vunpack.c.l.bf16 %v3524_v40 }
  0x39   : > { %2699 = vmatprep.subr.bf16.mxu1 %v3010_v26  ;;  %1939 = vadd.xlane.f32.xlu1 %v1892_v57 }
  0x3f   : > { %2652 = vmatpush3.bf16.xpose.msra.mxu0 %v3011_v27 }
  0x40   : > { %2700 = vmatpush3.bf16.xpose.msra.mxu1 %v3012_v28  ;;  %2653 = vmatprep.subr.bf16.mxu0 %v3013_v29 }
  0x41   : > { %2701 = vmatprep.subr.bf16.mxu1 %v3014_v30 }
  0x47   : > { %2654 = vmatpush3.bf16.xpose.msra.mxu0 %v3015_v31 }
  0x48   : > { %2702 = vmatpush3.bf16.xpose.msra.mxu1 %v3016_v32  ;;  %2735 = vmatprep.subr.bf16.mxu0 %v3329_v34 }
  0x49   : > { %2847 = vmatprep.subr.bf16.mxu1 %v3329_v34 }
  0x4e   : > { %2656 = vmatmul.mubr.bf16.vlgmr.msra.gmra.mxu0 %v3438_v19 }
  0x4f   : > { %2704 = vmatmul.mubr.bf16.vlgmr.msra.gmra.mxu1 %v3438_v19  ;;  %2657 = vmatprep.mubr.bf16.mxu0 %v3482_v33 }
  0x50   : > { %2705 = vmatprep.mubr.bf16.mxu1 %v3482_v33  ;;  %2736 = vmatpush3.bf16.msra.mxu0 %v3329_v34 }
  0x51   : > { %2848 = vmatpush3.bf16.msra.mxu1 %v3329_v34  ;;  %2737 = vmatprep.subr.bf16.mxu0 %v3329_v34 }
  0x52   : > { %2849 = vmatprep.subr.bf16.mxu1 %v3329_v34 }
  0x54   : > { %2738 = vmatpush3.bf16.msra.mxu0 %v3329_v34 }
  0x55   : > { %2850 = vmatpush3.bf16.msra.mxu1 %v3329_v34  ;;  %2739 = vmatprep.subr.bf16.mxu0 %v3329_v34 }
  0x56   : > { %2658 = vmatmul.mubr.bf16.gmra.mxu0 %v3482_v33  ;;  %2851 = vmatprep.subr.bf16.mxu1 %v3329_v34 }
  0x57   : > { %2706 = vmatmul.mubr.bf16.gmra.mxu1 %v3482_v33  ;;  %2659 = vmatprep.mubr.bf16.mxu0 %v3489_v35  ;;  %v1891_v33 = vmul.f32 %v1859_v24, %v1859_v24 }
  0x58   : > { %2707 = vmatprep.mubr.bf16.mxu1 %v3489_v35  ;;  %2740 = vmatpush3.bf16.msra.mxu0 %v3329_v34 }
  0x59   : > { %2852 = vmatpush3.bf16.msra.mxu1 %v3329_v34  ;;  %2741 = vmatprep.subr.bf16.mxu0 %v3329_v34 }
  0x5a   : > { %2853 = vmatprep.subr.bf16.mxu1 %v3329_v34  ;;  %1937 = vadd.xlane.f32.xlu0 %v1891_v33 }
  0x5c   : > { %2742 = vmatpush3.bf16.msra.mxu0 %v3329_v34 }
  0x5d   : > { %2854 = vmatpush3.bf16.msra.mxu1 %v3329_v34  ;;  %2743 = vmatprep.subr.bf16.mxu0 %v3329_v34 }
  0x5e   : > { %2660 = vmatmul.mubr.bf16.gmra.mxu0 %v3489_v35  ;;  %2855 = vmatprep.subr.bf16.mxu1 %v3329_v34 }
  0x5f   : > { %2708 = vmatmul.mubr.bf16.gmra.mxu1 %v3489_v35  ;;  %2661 = vmatprep.mubr.bf16.mxu0 %v3496_v36 }
  0x60   : > { %2709 = vmatprep.mubr.bf16.mxu1 %v3496_v36  ;;  %2744 = vmatpush3.bf16.msra.mxu0 %v3329_v34 }
  0x61   : > { %2856 = vmatpush3.bf16.msra.mxu1 %v3329_v34  ;;  %2745 = vmatprep.subr.bf16.mxu0 %v3329_v34 }
  0x62   : > { %2857 = vmatprep.subr.bf16.mxu1 %v3329_v34  ;;  %1941 = vadd.xlane.f32.xlu0 %v1893_v5  ;;  %v1869_v5 = vunpack.c.l.bf16 %v3559_v45 }
  0x64   : > { %2746 = vmatpush3.bf16.msra.mxu0 %v3329_v34 }
  0x65   : > { %2858 = vmatpush3.bf16.msra.mxu1 %v3329_v34  ;;  %2747 = vmatprep.subr.bf16.mxu0 %v3329_v34 }
  0x66   : > { %2662 = vmatmul.mubr.bf16.gmra.mxu0 %v3496_v36  ;;  %2859 = vmatprep.subr.bf16.mxu1 %v3329_v34 }
  0x67   : > { %2710 = vmatmul.mubr.bf16.gmra.mxu1 %v3496_v36  ;;  %2663 = vmatprep.mubr.bf16.mxu0 %v3503_v37 }
  0x68   : > { %2711 = vmatprep.mubr.bf16.mxu1 %v3503_v37  ;;  %2748 = vmatpush3.bf16.msra.mxu0 %v3329_v34 }
  0x69   : > { %2860 = vmatpush3.bf16.msra.mxu1 %v3329_v34  ;;  %2749 = vmatprep.subr.bf16.mxu0 %v3329_v34 }
  0x6a   : > { %2861 = vmatprep.subr.bf16.mxu1 %v3329_v34 }
  0x6c   : > { %2750 = vmatpush3.bf16.msra.mxu0 %v3329_v34 }
  0x6d   : > { %2862 = vmatpush3.bf16.msra.mxu1 %v3329_v34 }
  0x6e   : > { %2664 = vmatmul.mubr.bf16.gmra.mxu0 %v3503_v37 }
  0x6f   : > { %2712 = vmatmul.mubr.bf16.gmra.mxu1 %v3503_v37  ;;  %2665 = vmatprep.mubr.bf16.mxu0 %v3510_v38 }
  0x70   : > { %2713 = vmatprep.mubr.bf16.mxu1 %v3510_v38 }
  0x76   : > { %2666 = vmatmul.mubr.bf16.gmra.mxu0 %v3510_v38 }
  0x77   : > { %2714 = vmatmul.mubr.bf16.gmra.mxu1 %v3510_v38  ;;  %2667 = vmatprep.mubr.bf16.mxu0 %v3517_v39 }
  0x78   : > { %2715 = vmatprep.mubr.bf16.mxu1 %v3517_v39 }
  0x7e   : > { %2668 = vmatmul.mubr.bf16.gmra.mxu0 %v3517_v39 }
  0x7f   : > { %2716 = vmatmul.mubr.bf16.gmra.mxu1 %v3517_v39  ;;  %2669 = vmatprep.mubr.bf16.mxu0 %v3524_v40 }
  0x80   : > { %2717 = vmatprep.mubr.bf16.mxu1 %v3524_v40 }
  0x86   : > { %2670 = vmatmul.mubr.bf16.gmra.mxu0 %v3524_v40 }
  0x87   : > { %2718 = vmatmul.mubr.bf16.gmra.mxu1 %v3524_v40  ;;  %2671 = vmatprep.mubr.bf16.mxu0 %v3531_v41 }
  0x88   : > { %2719 = vmatprep.mubr.bf16.mxu1 %v3531_v41 }
  0x8e   : > { %2672 = vmatmul.mubr.bf16.gmra.mxu0 %v3531_v41 }
  0x8f   : > { %2720 = vmatmul.mubr.bf16.gmra.mxu1 %v3531_v41  ;;  %2673 = vmatprep.mubr.bf16.mxu0 %v3538_v42 }
  0x90   : > { %2721 = vmatprep.mubr.bf16.mxu1 %v3538_v42 }
  0x96   : > { %2674 = vmatmul.mubr.bf16.gmra.mxu0 %v3538_v42 }
  0x97   : > { %2722 = vmatmul.mubr.bf16.gmra.mxu1 %v3538_v42  ;;  %2675 = vmatprep.mubr.bf16.mxu0 %v3545_v43 }
  0x98   : > { %2723 = vmatprep.mubr.bf16.mxu1 %v3545_v43 }
  0x9e   : > { %2676 = vmatmul.mubr.bf16.gmra.mxu0 %v3545_v43 }
  0x9f   : > { %2724 = vmatmul.mubr.bf16.gmra.mxu1 %v3545_v43  ;;  %2677 = vmatprep.mubr.bf16.mxu0 %v3552_v44 }
  0xa0   : > { %2725 = vmatprep.mubr.bf16.mxu1 %v3552_v44 }
  0xa6   : > { %2678 = vmatmul.mubr.bf16.gmra.mxu0 %v3552_v44 }
  0xa7   : > { %2726 = vmatmul.mubr.bf16.gmra.mxu1 %v3552_v44  ;;  %2679 = vmatprep.mubr.bf16.mxu0 %v3559_v45 }
  0xa8   : > { %2727 = vmatprep.mubr.bf16.mxu1 %v3559_v45 }
  0xae   : > { %2680 = vmatmul.mubr.bf16.gmra.mxu0 %v3559_v45 }
  0xaf   : > { %2728 = vmatmul.mubr.bf16.gmra.mxu1 %v3559_v45  ;;  %2681 = vmatprep.mubr.bf16.mxu0 %v3566_v46 }
  0xb0   : > { %2729 = vmatprep.mubr.bf16.mxu1 %v3566_v46 }
  0xb6   : > { %2682 = vmatmul.mubr.bf16.gmra.mxu0 %v3566_v46 }
  0xb7   : > { %2730 = vmatmul.mubr.bf16.gmra.mxu1 %v3566_v46  ;;  %2683 = vmatprep.mubr.bf16.mxu0 %v3573_v47 }
  0xb8   : > { %2731 = vmatprep.mubr.bf16.mxu1 %v3573_v47 }
  0xbe   : > { %2684 = vmatmul.mubr.bf16.gmra.mxu0 %v3573_v47 }
  0xbf   : > { %2732 = vmatmul.mubr.bf16.gmra.mxu1 %v3573_v47  ;;  %2685 = vmatprep.mubr.bf16.mxu0 %v3580_v48 }
  0xc0   : > { %2733 = vmatprep.mubr.bf16.mxu1 %v3580_v48 }
  0xc6   : > { %2686 = vmatmul.mubr.bf16.gmra.mxu0 %v3580_v48 }
  0xc7   : > { %2734 = vmatmul.mubr.bf16.gmra.mxu1 %v3580_v48 }
 0x10e   : > { %v687_v10 = vpop.f32.mrf.mxu0 }
 0x10f   : > { %v880_v11 = vpop.f32.mrf.mxu1  ;;  %v2477_v17 = vadd.f32 -2.0, %v687_v10 }
 0x110   : > { %v689_v13 = vpop.f32.mrf.mxu0  ;;  %v2479_v21 = vadd.f32 -2.0, %v880_v11 }
 0x111   : > { %v882_v14 = vpop.f32.mrf.mxu1  ;;  %v2478_v25 = vadd.f32 -2.0, %v689_v13 }
 0x112   : > { %v691_v16 = vpop.f32.mrf.mxu0  ;;  %v2480_v29 = vadd.f32 -2.0, %v882_v14 }
 0x113   : > { %v2481_v18 = vadd.f32 -2.0, %v691_v16  ;;  %v884_v19 = vpop.f32.mrf.mxu1 }
 0x114   : > { %v2483_v22 = vadd.f32 -2.0, %v884_v19  ;;  %v693_v23 = vpop.f32.mrf.mxu0 }
 0x115   : > { %v1167_v26 = vpack.c.bf16 %v2481_v18, %v2477_v17  ;;  %v2482_v27 = vadd.f32 -2.0, %v693_v23  ;;  %v886_v28 = vpop.f32.mrf.mxu1  ;;  %v1894_v23 = vmul.f32 %v1862_v15, %v1862_v15 }
 0x116   : > { %v1169_v30 = vpack.c.bf16 %v2483_v22, %v2479_v21  ;;  %v2484_v31 = vadd.f32 -2.0, %v886_v28  ;;  %v697_v32 = vpop.f32.mrf.mxu0 }
 0x117   : > { %v1232_v34 = vmul.bf16 1069105081, %v1167_v26  ;;  %v1168_v35 = vpack.c.bf16 %v2482_v27, %v2478_v25  ;;  %v890_v36 = vpop.f32.mrf.mxu1  ;;  %v2485_v54 = vadd.f32 -2.0, %v697_v32  ;;  %v1863_v26 = vunpack.c.l.bf16 %v3538_v42  ;;  %1943 = vadd.xlane.f32.xlu1 %v1894_v23 }
 0x118   : > { %v1170_v37 = vpack.c.bf16 %v2484_v31, %v2480_v29  ;;  %v699_v38 = vpop.f32.mrf.mxu0  ;;  %v1238_v39 = vmul.bf16 1069105081, %v1169_v30  ;;  %v2487_v58 = vadd.f32 -2.0, %v890_v36  ;;  %v1864_v27 = vunpack.c.h.bf16 %v3538_v42 }
 0x119   : > { %v1235_v49 = vmul.bf16 1069105081, %v1168_v35  ;;  %v892_v50 = vpop.f32.mrf.mxu1  ;;  %3049 = vpow.bf16 %v1232_v34  ;;  %v2486_v62 = vadd.f32 -2.0, %v699_v38  ;;  %v1865_v30 = vunpack.c.l.bf16 %v3545_v43 }
 0x11a   : > { %v1241_v52 = vmul.bf16 1069105081, %v1170_v37  ;;  %v701_v53 = vpop.f32.mrf.mxu0  ;;  %v2488_v40 = vadd.f32 -2.0, %v892_v50  ;;  %v1866_v31 = vunpack.c.h.bf16 %v3545_v43  ;;  %v1895_v35 = vmul.f32 %v1863_v26, %v1863_v26 }
 0x11b   : > { %3051 = vpow.bf16 %v1235_v49  ;;  %v2489_v55 = vadd.f32 -2.0, %v701_v53  ;;  %v894_v56 = vpop.f32.mrf.mxu1  ;;  %v1896_v36 = vmul.f32 %v1864_v27, %v1864_v27  ;;  %v1901_v23 = vmul.f32 %v1869_v5, %v1869_v5 }
 0x11c   : > { %3053 = vpow.bf16 %v1241_v52  ;;  %v2491_v59 = vadd.f32 -2.0, %v894_v56  ;;  %v703_v60 = vpop.f32.mrf.mxu0  ;;  %1945 = vadd.xlane.f32.xlu0 %v1895_v35  ;;  %v1897_v52 = vmul.f32 %v1865_v30, %v1865_v30  ;;  %v1898_v43 = vmul.f32 %v1866_v31, %v1866_v31 }
 0x11d   : > { %3055 = vpow.bf16 %v1238_v39  ;;  %v1171_v63 = vpack.c.bf16 %v2489_v55, %v2485_v54  ;;  %v2490_v0 = vadd.f32 -2.0, %v703_v60  ;;  %v896_v1 = vpop.f32.mrf.mxu1  ;;  %1947 = vadd.xlane.f32.xlu1 %v1896_v36  ;;  %v1867_v56 = vunpack.c.l.bf16 %v3552_v44 }
 0x11e   : > { %v1173_v2 = vpack.c.bf16 %v2491_v59, %v2487_v58  ;;  %v2492_v3 = vadd.f32 -2.0, %v896_v1  ;;  %v707_v4 = vpop.f32.mrf.mxu0  ;;  %v1900_v44 = vmul.f32 %v1868_v61, %v1868_v61 }
 0x11f   : > { %v1244_v6 = vmul.bf16 1069105081, %v1171_v63  ;;  %v1172_v7 = vpack.c.bf16 %v2490_v0, %v2486_v62  ;;  %v900_v8 = vpop.f32.mrf.mxu1  ;;  %v2493_v13 = vadd.f32 -2.0, %v707_v4  ;;  %v1899_v4 = vmul.f32 %v1867_v56, %v1867_v56 }
 0x120   : > { %v1250_v9 = vmul.bf16 1069105081, %v1173_v2  ;;  %v1174_v10 = vpack.c.bf16 %v2492_v3, %v2488_v40  ;;  %v709_v11 = vpop.f32.mrf.mxu0  ;;  %v2495_v17 = vadd.f32 -2.0, %v900_v8  ;;  %1949 = vadd.xlane.f32.xlu0 %v1897_v52 }
 0x121   : > { %3057 = vpow.bf16 %v1244_v6  ;;  %v1247_v12 = vmul.bf16 1069105081, %v1172_v7  ;;  %v902_v14 = vpop.f32.mrf.mxu1  ;;  %v2494_v18 = vadd.f32 -2.0, %v709_v11  ;;  %1951 = vadd.xlane.f32.xlu1 %v1898_v43 }
 0x122   : > { %3059 = vpow.bf16 %v1250_v9  ;;  %v1253_v16 = vmul.bf16 1069105081, %v1174_v10  ;;  %v711_v19 = vpop.f32.mrf.mxu0  ;;  %v2496_v20 = vadd.f32 -2.0, %v902_v14  ;;  %v1870_v9 = vunpack.c.h.bf16 %v3559_v45 }
 0x123   : > { %3061 = vpow.bf16 %v1247_v12  ;;  %v2497_v21 = vadd.f32 -2.0, %v711_v19  ;;  %v904_v22 = vpop.f32.mrf.mxu1  ;;  %v1871_v14 = vunpack.c.l.bf16 %v3566_v46  ;;  %v1872_v19 = vunpack.c.h.bf16 %v3566_v46 }
 0x124   : > { %3063 = vpow.bf16 %v1253_v16  ;;  %v2499_v24 = vadd.f32 -2.0, %v904_v22  ;;  %v713_v25 = vpop.f32.mrf.mxu0  ;;  %1953 = vadd.xlane.f32.xlu0 %v1899_v4  ;;  %v1902_v27 = vmul.f32 %v1870_v9, %v1870_v9 }
 0x125   : > { %v1175_v28 = vpack.c.bf16 %v2497_v21, %v2493_v13  ;;  %v2498_v29 = vadd.f32 -2.0, %v713_v25  ;;  %v906_v41 = vpop.f32.mrf.mxu1  ;;  %1955 = vadd.xlane.f32.xlu1 %v1900_v44  ;;  %v1903_v31 = vmul.f32 %v1871_v14, %v1871_v14 }
 0x126   : > { %v1177_v32 = vpack.c.bf16 %v2499_v24, %v2495_v17  ;;  %v2500_v33 = vadd.f32 -2.0, %v906_v41  ;;  %v717_v34 = vpop.f32.mrf.mxu0 }
 0x127   : > { %v1256_v37 = vmul.bf16 1069105081, %v1175_v28  ;;  %v1176_v38 = vpack.c.bf16 %v2498_v29, %v2494_v18  ;;  %v910_v39 = vpop.f32.mrf.mxu1  ;;  %v3050_v49 = vpop.eup %3049  ;;  %v2501_v59 = vadd.f32 -2.0, %v717_v34  ;;  %v1904_v34 = vmul.f32 %v1872_v19, %v1872_v19 }
 0x128   : > { %v1262_v50 = vmul.bf16 1069105081, %v1177_v32  ;;  %v1178_v51 = vpack.c.bf16 %v2500_v33, %v2496_v20  ;;  %v719_v42 = vpop.f32.mrf.mxu0  ;;  %v2503_v63 = vadd.f32 -2.0, %v910_v39  ;;  %1957 = vadd.xlane.f32.xlu0 %v1901_v23 }
 0x129   : > { %v3052_v53 = vpop.eup %3051  ;;  %3065 = vpow.bf16 %v1256_v37  ;;  %v1259_v54 = vmul.bf16 1069105081, %v1176_v38  ;;  %v912_v55 = vpop.f32.mrf.mxu1  ;;  %v2502_v0 = vadd.f32 -2.0, %v719_v42  ;;  %v1873_v38 = vunpack.c.l.bf16 %v3573_v47  ;;  %1959 = vadd.xlane.f32.xlu1 %v1902_v27 }
 0x12a   : > { %v3054_v57 = vpop.eup %3053  ;;  %3067 = vpow.bf16 %v1262_v50  ;;  %v1265_v58 = vmul.bf16 1069105081, %v1178_v51  ;;  %v721_v60 = vpop.f32.mrf.mxu0  ;;  %1455 = vmatprep.mubr.bf16.mxu0 %v3052_v53  ;;  %v2504_v10 = vadd.f32 -2.0, %v912_v55  ;;  %v1874_v51 = vunpack.c.h.bf16 %v3573_v47 }
 0x12b   : > { %v3056_v62 = vpop.eup %3055  ;;  %3069 = vpow.bf16 %v1259_v54  ;;  %v2505_v1 = vadd.f32 -2.0, %v721_v60  ;;  %v914_v40 = vpop.f32.mrf.mxu1  ;;  %1616 = vmatprep.mubr.bf16.mxu1 %v3054_v57  ;;  %1456 = vmatmul.mubr.bf16.vlgmr.msra.gmra.mxu0 %v3050_v49 }
 0x12c   : > { %3071 = vpow.bf16 %v1265_v58  ;;  %v2507_v2 = vadd.f32 -2.0, %v914_v40  ;;  %1617 = vmatmul.mubr.bf16.vlgmr.msra.gmra.mxu1 %v3056_v62  ;;  %v723_v3 = vpop.f32.mrf.mxu0  ;;  %v1875_v58 = vunpack.c.l.bf16 %v3580_v48  ;;  %1961 = vadd.xlane.f32.xlu0 %v1903_v31  ;;  %v1905_v62 = vmul.f32 %v1873_v38, %v1873_v38 }
 0x12d   : > { %v1179_v6 = vpack.c.bf16 %v2505_v1, %v2501_v59  ;;  %v2506_v7 = vadd.f32 -2.0, %v723_v3  ;;  %v916_v8 = vpop.f32.mrf.mxu1  ;;  %1963 = vadd.xlane.f32.xlu1 %v1904_v34 }
 0x12e   : > { %v1181_v11 = vpack.c.bf16 %v2507_v2, %v2503_v63  ;;  %v2508_v12 = vadd.f32 -2.0, %v916_v8  ;;  %v727_v13 = vpop.f32.mrf.mxu0  ;;  %v1876_v63 = vunpack.c.h.bf16 %v3580_v48  ;;  %v1906_v2 = vmul.f32 %v1874_v51, %v1874_v51 }
 0x12f   : > { %v3058_v15 = vpop.eup %3057  ;;  %v1268_v16 = vmul.bf16 1069105081, %v1179_v6  ;;  %v1180_v17 = vpack.c.bf16 %v2506_v7, %v2502_v0  ;;  %v920_v18 = vpop.f32.mrf.mxu1  ;;  %v2509_v41 = vadd.f32 -2.0, %v727_v13  ;;  %v1907_v44 = vmul.f32 %v1875_v58, %v1875_v58 }
 0x130   : > { %v3060_v20 = vpop.eup %3059  ;;  %v1182_v21 = vpack.c.bf16 %v2508_v12, %v2504_v10  ;;  %v729_v22 = vpop.f32.mrf.mxu0  ;;  %v1274_v25 = vmul.bf16 1069105081, %v1181_v11  ;;  %v2511_v46 = vadd.f32 -2.0, %v920_v18  ;;  %1965 = vadd.xlane.f32.xlu0 %v1905_v62  ;;  %v1908_v11 = vmul.f32 %v1876_v63, %v1876_v63 }
 0x131   : > { %v3062_v24 = vpop.eup %3061  ;;  %v1271_v45 = vmul.bf16 1069105081, %v1180_v17  ;;  %v922_v26 = vpop.f32.mrf.mxu1  ;;  %3073 = vpow.bf16 %v1268_v16  ;;  %v2510_v35 = vadd.f32 -2.0, %v729_v22  ;;  %1967 = vadd.xlane.f32.xlu1 %v1906_v2 }
 0x132   : > { %v3064_v28 = vpop.eup %3063  ;;  %v1277_v29 = vmul.bf16 1069105081, %v1182_v21  ;;  %v731_v30 = vpop.f32.mrf.mxu0  ;;  %1463 = vmatprep.mubr.bf16.mxu0 %v3062_v24  ;;  %v2512_v42 = vadd.f32 -2.0, %v922_v26 }
 0x133   : > { %3075 = vpow.bf16 %v1271_v45  ;;  %v2513_v32 = vadd.f32 -2.0, %v731_v30  ;;  %v924_v33 = vpop.f32.mrf.mxu1  ;;  %1624 = vmatprep.mubr.bf16.mxu1 %v3064_v28  ;;  %1464 = vmatmul.mubr.bf16.gmra.mxu0 %v3058_v15 }
 0x134   : > { %3077 = vpow.bf16 %v1277_v29  ;;  %v2515_v36 = vadd.f32 -2.0, %v924_v33  ;;  %1625 = vmatmul.mubr.bf16.gmra.mxu1 %v3060_v20  ;;  %v733_v37 = vpop.f32.mrf.mxu0  ;;  %1969 = vadd.xlane.f32.xlu0 %v1907_v44 }
 0x135   : > { %3079 = vpow.bf16 %v1274_v25  ;;  %v1183_v39 = vpack.c.bf16 %v2513_v32, %v2509_v41  ;;  %v2514_v49 = vadd.f32 -2.0, %v733_v37  ;;  %v926_v50 = vpop.f32.mrf.mxu1  ;;  %1971 = vadd.xlane.f32.xlu1 %v1908_v11 }
 0x136   : > { %v1185_v52 = vpack.c.bf16 %v2515_v36, %v2511_v46  ;;  %v2516_v53 = vadd.f32 -2.0, %v926_v50  ;;  %v737_v54 = vpop.f32.mrf.mxu0 }
 0x137   : > { %v3066_v55 = vpop.eup %3065  ;;  %v1280_v43 = vmul.bf16 1069105081, %v1183_v39  ;;  %v1184_v56 = vpack.c.bf16 %v2514_v49, %v2510_v35  ;;  %v930_v57 = vpop.f32.mrf.mxu1  ;;  %v2517_v6 = vadd.f32 -2.0, %v737_v54 }
 0x138   : > { %v3068_v59 = vpop.eup %3067  ;;  %v1186_v60 = vpack.c.bf16 %v2516_v53, %v2512_v42  ;;  %v739_v61 = vpop.f32.mrf.mxu0  ;;  %v1286_v1 = vmul.bf16 1069105081, %v1185_v52  ;;  %v2519_v48 = vadd.f32 -2.0, %v930_v57 }
 0x139   : > { %v3070_v0 = vpop.eup %3069  ;;  %v1283_v47 = vmul.bf16 1069105081, %v1184_v56  ;;  %v932_v40 = vpop.f32.mrf.mxu1  ;;  %3081 = vpow.bf16 %v1280_v43  ;;  %v2518_v12 = vadd.f32 -2.0, %v739_v61 }
 0x13a   : > { %v3072_v3 = vpop.eup %3071  ;;  %v1289_v4 = vmul.bf16 1069105081, %v1186_v60  ;;  %v741_v5 = vpop.f32.mrf.mxu0  ;;  %1471 = vmatprep.mubr.bf16.mxu0 %v3070_v0  ;;  %v2520_v16 = vadd.f32 -2.0, %v932_v40 }
 0x13b   : > { %3083 = vpow.bf16 %v1283_v47  ;;  %v2521_v7 = vadd.f32 -2.0, %v741_v5  ;;  %v934_v8 = vpop.f32.mrf.mxu1  ;;  %1632 = vmatprep.mubr.bf16.mxu1 %v3072_v3  ;;  %1472 = vmatmul.mubr.bf16.gmra.mxu0 %v3066_v55 }
 0x13c   : > { %3085 = vpow.bf16 %v1289_v4  ;;  %v2523_v9 = vadd.f32 -2.0, %v934_v8  ;;  %1633 = vmatmul.mubr.bf16.gmra.mxu1 %v3068_v59  ;;  %v743_v10 = vpop.f32.mrf.mxu0 }
 0x13d   : > { %3087 = vpow.bf16 %v1286_v1  ;;  %v1187_v13 = vpack.c.bf16 %v2521_v7, %v2517_v6  ;;  %v2522_v14 = vadd.f32 -2.0, %v743_v10  ;;  %v936_v15 = vpop.f32.mrf.mxu1 }
 0x13e   : > { %v1189_v17 = vpack.c.bf16 %v2523_v9, %v2519_v48  ;;  %v2524_v18 = vadd.f32 -2.0, %v936_v15  ;;  %v747_v19 = vpop.f32.mrf.mxu0 }
 0x13f   : > { %v1292_v20 = vmul.bf16 1069105081, %v1187_v13  ;;  %v1188_v21 = vpack.c.bf16 %v2522_v14, %v2518_v12  ;;  %v940_v22 = vpop.f32.mrf.mxu1  ;;  %v3074_v23 = vpop.eup %3073  ;;  %v2525_v46 = vadd.f32 -2.0, %v747_v19 }
 0x140   : > { %v1190_v24 = vpack.c.bf16 %v2524_v18, %v2520_v16  ;;  %v749_v25 = vpop.f32.mrf.mxu0  ;;  %v1298_v26 = vmul.bf16 1069105081, %v1189_v17  ;;  %v2527_v34 = vadd.f32 -2.0, %v940_v22 }
 0x141   : > { %v3076_v45 = vpop.eup %3075  ;;  %v1295_v27 = vmul.bf16 1069105081, %v1188_v21  ;;  %v942_v28 = vpop.f32.mrf.mxu1  ;;  %3089 = vpow.bf16 %v1292_v20  ;;  %v2526_v37 = vadd.f32 -2.0, %v749_v25 }
 0x142   : > { %v3078_v29 = vpop.eup %3077  ;;  %v1301_v41 = vmul.bf16 1069105081, %v1190_v24  ;;  %v751_v30 = vpop.f32.mrf.mxu0  ;;  %1479 = vmatprep.mubr.bf16.mxu0 %v3076_v45  ;;  %v2528_v50 = vadd.f32 -2.0, %v942_v28 }
 0x143   : > { %v3080_v31 = vpop.eup %3079  ;;  %3091 = vpow.bf16 %v1295_v27  ;;  %v2529_v32 = vadd.f32 -2.0, %v751_v30  ;;  %v944_v33 = vpop.f32.mrf.mxu1  ;;  %1640 = vmatprep.mubr.bf16.mxu1 %v3078_v29  ;;  %1480 = vmatmul.mubr.bf16.gmra.mxu0 %v3074_v23 }
 0x144   : > { %3093 = vpow.bf16 %v1301_v41  ;;  %v2531_v35 = vadd.f32 -2.0, %v944_v33  ;;  %1641 = vmatmul.mubr.bf16.gmra.mxu1 %v3080_v31  ;;  %v753_v36 = vpop.f32.mrf.mxu0 }
 0x145   : > { %3095 = vpow.bf16 %v1298_v26  ;;  %v1191_v38 = vpack.c.bf16 %v2529_v32, %v2525_v46  ;;  %v2530_v39 = vadd.f32 -2.0, %v753_v36  ;;  %v946_v49 = vpop.f32.mrf.mxu1 }
 0x146   : > { %v1193_v51 = vpack.c.bf16 %v2531_v35, %v2527_v34  ;;  %v2532_v42 = vadd.f32 -2.0, %v946_v49  ;;  %v757_v52 = vpop.f32.mrf.mxu0 }
 0x147   : > { %v1304_v53 = vmul.bf16 1069105081, %v1191_v38  ;;  %v1192_v54 = vpack.c.bf16 %v2530_v39, %v2526_v37  ;;  %v950_v55 = vpop.f32.mrf.mxu1  ;;  %v3082_v43 = vpop.eup %3081  ;;  %v2533_v47 = vadd.f32 -2.0, %v757_v52 }
 0x148   : > { %v1194_v56 = vpack.c.bf16 %v2532_v42, %v2528_v50  ;;  %v759_v57 = vpop.f32.mrf.mxu0  ;;  %v1310_v59 = vmul.bf16 1069105081, %v1193_v51  ;;  %v2535_v3 = vadd.f32 -2.0, %v950_v55 }
 0x149   : > { %v3084_v58 = vpop.eup %3083  ;;  %v1307_v60 = vmul.bf16 1069105081, %v1192_v54  ;;  %v952_v61 = vpop.f32.mrf.mxu1  ;;  %3097 = vpow.bf16 %v1304_v53  ;;  %v2534_v6 = vadd.f32 -2.0, %v759_v57 }
 0x14a   : > { %v3086_v62 = vpop.eup %3085  ;;  %v1313_v63 = vmul.bf16 1069105081, %v1194_v56  ;;  %v761_v0 = vpop.f32.mrf.mxu0  ;;  %1487 = vmatprep.mubr.bf16.mxu0 %v3084_v58  ;;  %v2536_v48 = vadd.f32 -2.0, %v952_v61 }
 0x14b   : > { %v3088_v1 = vpop.eup %3087  ;;  %3099 = vpow.bf16 %v1307_v60  ;;  %v2537_v40 = vadd.f32 -2.0, %v761_v0  ;;  %v954_v2 = vpop.f32.mrf.mxu1  ;;  %1648 = vmatprep.mubr.bf16.mxu1 %v3086_v62  ;;  %1488 = vmatmul.mubr.bf16.gmra.mxu0 %v3082_v43 }
 0x14c   : > { %3101 = vpow.bf16 %v1313_v63  ;;  %v2539_v4 = vadd.f32 -2.0, %v954_v2  ;;  %1649 = vmatmul.mubr.bf16.gmra.mxu1 %v3088_v1  ;;  %v763_v5 = vpop.f32.mrf.mxu0 }
 0x14d   : > { %3103 = vpow.bf16 %v1310_v59  ;;  %v1195_v7 = vpack.c.bf16 %v2537_v40, %v2533_v47  ;;  %v2538_v8 = vadd.f32 -2.0, %v763_v5  ;;  %v956_v44 = vpop.f32.mrf.mxu1 }
 0x14e   : > { %v1197_v9 = vpack.c.bf16 %v2539_v4, %v2535_v3  ;;  %v2540_v10 = vadd.f32 -2.0, %v956_v44  ;;  %v767_v11 = vpop.f32.mrf.mxu0 }
 0x14f   : > { %v1316_v12 = vmul.bf16 1069105081, %v1195_v7  ;;  %v1196_v13 = vpack.c.bf16 %v2538_v8, %v2534_v6  ;;  %v960_v14 = vpop.f32.mrf.mxu1  ;;  %v3090_v15 = vpop.eup %3089  ;;  %v2541_v45 = vadd.f32 -2.0, %v767_v11 }
 0x150   : > { %v1198_v16 = vpack.c.bf16 %v2540_v10, %v2536_v48  ;;  %v769_v17 = vpop.f32.mrf.mxu0  ;;  %v1322_v19 = vmul.bf16 1069105081, %v1197_v9  ;;  %v2543_v28 = vadd.f32 -2.0, %v960_v14 }
 0x151   : > { %v3092_v18 = vpop.eup %3091  ;;  %v1319_v20 = vmul.bf16 1069105081, %v1196_v13  ;;  %v962_v21 = vpop.f32.mrf.mxu1  ;;  %3105 = vpow.bf16 %v1316_v12  ;;  %v2542_v30 = vadd.f32 -2.0, %v769_v17 }
 0x152   : > { %v3094_v22 = vpop.eup %3093  ;;  %v1325_v23 = vmul.bf16 1069105081, %v1198_v16  ;;  %v771_v24 = vpop.f32.mrf.mxu0  ;;  %1495 = vmatprep.mubr.bf16.mxu0 %v3092_v18  ;;  %v2544_v33 = vadd.f32 -2.0, %v962_v21 }
 0x153   : > { %v3096_v25 = vpop.eup %3095  ;;  %3107 = vpow.bf16 %v1319_v20  ;;  %v2545_v26 = vadd.f32 -2.0, %v771_v24  ;;  %v964_v27 = vpop.f32.mrf.mxu1  ;;  %1656 = vmatprep.mubr.bf16.mxu1 %v3094_v22  ;;  %1496 = vmatmul.mubr.bf16.gmra.mxu0 %v3090_v15 }
 0x154   : > { %3109 = vpow.bf16 %v1325_v23  ;;  %v2547_v29 = vadd.f32 -2.0, %v964_v27  ;;  %1657 = vmatmul.mubr.bf16.gmra.mxu1 %v3096_v25  ;;  %v773_v41 = vpop.f32.mrf.mxu0 }
 0x155   : > { %3111 = vpow.bf16 %v1322_v19  ;;  %v1199_v31 = vpack.c.bf16 %v2545_v26, %v2541_v45  ;;  %v2546_v46 = vadd.f32 -2.0, %v773_v41  ;;  %v966_v32 = vpop.f32.mrf.mxu1 }
 0x156   : > { %v1201_v34 = vpack.c.bf16 %v2547_v29, %v2543_v28  ;;  %v2548_v35 = vadd.f32 -2.0, %v966_v32  ;;  %v777_v36 = vpop.f32.mrf.mxu0 }
 0x157   : > { %v1328_v37 = vmul.bf16 1069105081, %v1199_v31  ;;  %v1200_v38 = vpack.c.bf16 %v2546_v46, %v2542_v30  ;;  %v970_v39 = vpop.f32.mrf.mxu1  ;;  %v3098_v49 = vpop.eup %3097  ;;  %v2549_v58 = vadd.f32 -2.0, %v777_v36 }
 0x158   : > { %v1202_v50 = vpack.c.bf16 %v2548_v35, %v2544_v33  ;;  %v779_v51 = vpop.f32.mrf.mxu0  ;;  %v1334_v52 = vmul.bf16 1069105081, %v1201_v34  ;;  %v2551_v61 = vadd.f32 -2.0, %v970_v39 }
 0x159   : > { %v3100_v42 = vpop.eup %3099  ;;  %v1331_v53 = vmul.bf16 1069105081, %v1200_v38  ;;  %v972_v54 = vpop.f32.mrf.mxu1  ;;  %3113 = vpow.bf16 %v1328_v37  ;;  %v2550_v0 = vadd.f32 -2.0, %v779_v51 }
 0x15a   : > { %v3102_v55 = vpop.eup %3101  ;;  %v1337_v43 = vmul.bf16 1069105081, %v1202_v50  ;;  %v781_v56 = vpop.f32.mrf.mxu0  ;;  %1503 = vmatprep.mubr.bf16.mxu0 %v3100_v42  ;;  %v2552_v2 = vadd.f32 -2.0, %v972_v54 }
 0x15b   : > { %v3104_v57 = vpop.eup %3103  ;;  %3115 = vpow.bf16 %v1331_v53  ;;  %v2553_v59 = vadd.f32 -2.0, %v781_v56  ;;  %v974_v60 = vpop.f32.mrf.mxu1  ;;  %1664 = vmatprep.mubr.bf16.mxu1 %v3102_v55  ;;  %1504 = vmatmul.mubr.bf16.gmra.mxu0 %v3098_v49  ;;  %v3330_v56 = vmov 0.0  }
 0x15c   : > { %3117 = vpow.bf16 %v1337_v43  ;;  %v2555_v62 = vadd.f32 -2.0, %v974_v60  ;;  %1665 = vmatmul.mubr.bf16.gmra.mxu1 %v3104_v57  ;;  %v783_v63 = vpop.f32.mrf.mxu0  ;;  %237 = vst.msk [vmem:[#allocation2] sm:$0xff] %vm236_vm0, %v3330_v56  ;;  %238 = vst.msk [vmem:[#allocation2 + $0x8] sm:$0xff] %vm236_vm0, %v3330_v56 }
 0x15d   : > { %3119 = vpow.bf16 %v1334_v52  ;;  %v1203_v1 = vpack.c.bf16 %v2553_v59, %v2549_v58  ;;  %v2554_v47 = vadd.f32 -2.0, %v783_v63  ;;  %v976_v40 = vpop.f32.mrf.mxu1  ;;  %239 = vst.msk [vmem:[#allocation2 + $0x10] sm:$0xff] %vm236_vm0, %v3330_v56  ;;  %240 = vst.msk [vmem:[#allocation2 + $0x18] sm:$0xff] %vm236_vm0, %v3330_v56 }
 0x15e   : > { %v1205_v3 = vpack.c.bf16 %v2555_v62, %v2551_v61  ;;  %v2556_v4 = vadd.f32 -2.0, %v976_v40  ;;  %v787_v5 = vpop.f32.mrf.mxu0  ;;  %241 = vst.msk [vmem:[#allocation2 + $0x20] sm:$0xff] %vm236_vm0, %v3330_v56  ;;  %242 = vst.msk [vmem:[#allocation2 + $0x28] sm:$0xff] %vm236_vm0, %v3330_v56 }
 0x15f   : > { %v1340_v6 = vmul.bf16 1069105081, %v1203_v1  ;;  %v1204_v7 = vpack.c.bf16 %v2554_v47, %v2550_v0  ;;  %v980_v8 = vpop.f32.mrf.mxu1  ;;  %v3106_v44 = vpop.eup %3105  ;;  %v2557_v18 = vadd.f32 -2.0, %v787_v5  ;;  %243 = vst.msk [vmem:[#allocation2 + $0x30] sm:$0xff] %vm236_vm0, %v3330_v56  ;;  %244 = vst.msk [vmem:[#allocation2 + $0x38] sm:$0xff] %vm236_vm0, %v3330_v56 }
 0x160   : > { %v1206_v48 = vpack.c.bf16 %v2556_v4, %v2552_v2  ;;  %v789_v9 = vpop.f32.mrf.mxu0  ;;  %v1346_v11 = vmul.bf16 1069105081, %v1205_v3  ;;  %v2559_v21 = vadd.f32 -2.0, %v980_v8  ;;  %245 = vst.msk [vmem:[#allocation2 + $0x40] sm:$0xff] %vm236_vm0, %v3330_v56  ;;  %246 = vst.msk [vmem:[#allocation2 + $0x48] sm:$0xff] %vm236_vm0, %v3330_v56 }
 0x161   : > { %v3108_v10 = vpop.eup %3107  ;;  %v1343_v12 = vmul.bf16 1069105081, %v1204_v7  ;;  %v982_v13 = vpop.f32.mrf.mxu1  ;;  %3121 = vpow.bf16 %v1340_v6  ;;  %v2558_v24 = vadd.f32 -2.0, %v789_v9  ;;  %247 = vst.msk [vmem:[#allocation2 + $0x50] sm:$0xff] %vm236_vm0, %v3330_v56  ;;  %248 = vst.msk [vmem:[#allocation2 + $0x58] sm:$0xff] %vm236_vm0, %v3330_v56 }
 0x162   : > { %v3110_v14 = vpop.eup %3109  ;;  %v1349_v15 = vmul.bf16 1069105081, %v1206_v48  ;;  %v791_v16 = vpop.f32.mrf.mxu0  ;;  %1511 = vmatprep.mubr.bf16.mxu0 %v3108_v10  ;;  %v2560_v27 = vadd.f32 -2.0, %v982_v13  ;;  %249 = vst.msk [vmem:[#allocation2 + $0x60] sm:$0xff] %vm236_vm0, %v3330_v56  ;;  %250 = vst.msk [vmem:[#allocation2 + $0x68] sm:$0xff] %vm236_vm0, %v3330_v56 }
 0x163   : > { %v3112_v17 = vpop.eup %3111  ;;  %3123 = vpow.bf16 %v1343_v12  ;;  %v2561_v19 = vadd.f32 -2.0, %v791_v16  ;;  %v984_v20 = vpop.f32.mrf.mxu1  ;;  %1672 = vmatprep.mubr.bf16.mxu1 %v3110_v14  ;;  %1512 = vmatmul.mubr.bf16.gmra.mxu0 %v3106_v44  ;;  %251 = vst.msk [vmem:[#allocation2 + $0x70] sm:$0xff] %vm236_vm0, %v3330_v56  ;;  %252 = vst.msk [vmem:[#allocation2 + $0x78] sm:$0xff] %vm236_vm0, %v3330_v56 }
 0x164   : > { %3125 = vpow.bf16 %v1349_v15  ;;  %v2563_v22 = vadd.f32 -2.0, %v984_v20  ;;  %1673 = vmatmul.mubr.bf16.gmra.mxu1 %v3112_v17  ;;  %v793_v23 = vpop.f32.mrf.mxu0  ;;  %253 = vst.msk [vmem:[#allocation2 + $0x80] sm:$0xff] %vm236_vm0, %v3330_v56  ;;  %254 = vst.msk [vmem:[#allocation2 + $0x88] sm:$0xff] %vm236_vm0, %v3330_v56 }
 0x165   : > { %3127 = vpow.bf16 %v1346_v11  ;;  %v1207_v25 = vpack.c.bf16 %v2561_v19, %v2557_v18  ;;  %v2562_v45 = vadd.f32 -2.0, %v793_v23  ;;  %v986_v26 = vpop.f32.mrf.mxu1  ;;  %255 = vst.msk [vmem:[#allocation2 + $0x90] sm:$0xff] %vm236_vm0, %v3330_v56  ;;  %256 = vst.msk [vmem:[#allocation2 + $0x98] sm:$0xff] %vm236_vm0, %v3330_v56 }
 0x166   : > { %v1209_v28 = vpack.c.bf16 %v2563_v22, %v2559_v21  ;;  %v2564_v29 = vadd.f32 -2.0, %v986_v26  ;;  %v797_v41 = vpop.f32.mrf.mxu0  ;;  %257 = vst.msk [vmem:[#allocation2 + $0xa0] sm:$0xff] %vm236_vm0, %v3330_v56  ;;  %258 = vst.msk [vmem:[#allocation2 + $0xa8] sm:$0xff] %vm236_vm0, %v3330_v56 }
 0x167   : > { %v1352_v30 = vmul.bf16 1069105081, %v1207_v25  ;;  %v1208_v31 = vpack.c.bf16 %v2562_v45, %v2558_v24  ;;  %v990_v46 = vpop.f32.mrf.mxu1  ;;  %v3114_v32 = vpop.eup %3113  ;;  %v2565_v42 = vadd.f32 -2.0, %v797_v41  ;;  %259 = vst.msk [vmem:[#allocation2 + $0xb0] sm:$0xff] %vm236_vm0, %v3330_v56  ;;  %260 = vst.msk [vmem:[#allocation2 + $0xb8] sm:$0xff] %vm236_vm0, %v3330_v56 }
 0x168   : > { %v1210_v33 = vpack.c.bf16 %v2564_v29, %v2560_v27  ;;  %v799_v34 = vpop.f32.mrf.mxu0  ;;  %v1358_v36 = vmul.bf16 1069105081, %v1209_v28  ;;  %v2567_v54 = vadd.f32 -2.0, %v990_v46  ;;  %261 = vst.msk [vmem:[#allocation2 + $0xc0] sm:$0xff] %vm236_vm0, %v3330_v56  ;;  %262 = vst.msk [vmem:[#allocation2 + $0xc8] sm:$0xff] %vm236_vm0, %v3330_v56 }
 0x169   : > { %v3116_v35 = vpop.eup %3115  ;;  %v1355_v37 = vmul.bf16 1069105081, %v1208_v31  ;;  %v992_v38 = vpop.f32.mrf.mxu1  ;;  %3129 = vpow.bf16 %v1352_v30  ;;  %263 = vst.msk [vmem:[#allocation2 + $0xd0] sm:$0xff] %vm236_vm0, %v3330_v56  ;;  %264 = vst.msk [vmem:[#allocation2 + $0xd8] sm:$0xff] %vm236_vm0, %v3330_v56  ;;  %v2566_v57 = vadd.f32 -2.0, %v799_v34 }
 0x16a   : > { %v3118_v39 = vpop.eup %3117  ;;  %v1361_v49 = vmul.bf16 1069105081, %v1210_v33  ;;  %v801_v50 = vpop.f32.mrf.mxu0  ;;  %1519 = vmatprep.mubr.bf16.mxu0 %v3116_v35  ;;  %265 = vst.msk [vmem:[#allocation2 + $0xe0] sm:$0xff] %vm236_vm0, %v3330_v56  ;;  %266 = vst.msk [vmem:[#allocation2 + $0xe8] sm:$0xff] %vm236_vm0, %v3330_v56  ;;  %v2568_v61 = vadd.f32 -2.0, %v992_v38 }
 0x16b   : > { %v3120_v51 = vpop.eup %3119  ;;  %3131 = vpow.bf16 %v1355_v37  ;;  %v2569_v52 = vadd.f32 -2.0, %v801_v50  ;;  %v994_v53 = vpop.f32.mrf.mxu1  ;;  %1680 = vmatprep.mubr.bf16.mxu1 %v3118_v39  ;;  %1520 = vmatmul.mubr.bf16.gmra.mxu0 %v3114_v32  ;;  %267 = vst.msk [vmem:[#allocation2 + $0xf0] sm:$0xff] %vm236_vm0, %v3330_v56  ;;  %268 = vst.msk [vmem:[#allocation2 + $0xf8] sm:$0xff] %vm236_vm0, %v3330_v56 }
 0x16c   : > { %3133 = vpow.bf16 %v1361_v49  ;;  %v2571_v55 = vadd.f32 -2.0, %v994_v53  ;;  %1681 = vmatmul.mubr.bf16.gmra.mxu1 %v3120_v51  ;;  %v803_v43 = vpop.f32.mrf.mxu0 }
 0x16d   : > { %3135 = vpow.bf16 %v1358_v36  ;;  %v1211_v58 = vpack.c.bf16 %v2569_v52, %v2565_v42  ;;  %v2570_v59 = vadd.f32 -2.0, %v803_v43  ;;  %v996_v60 = vpop.f32.mrf.mxu1 }
 0x16e   : > { %v1213_v62 = vpack.c.bf16 %v2571_v55, %v2567_v54  ;;  %v2572_v63 = vadd.f32 -2.0, %v996_v60  ;;  %v807_v0 = vpop.f32.mrf.mxu0 }
 0x16f   : > { %v1364_v1 = vmul.bf16 1069105081, %v1211_v58  ;;  %v1212_v47 = vpack.c.bf16 %v2570_v59, %v2566_v57  ;;  %v1000_v40 = vpop.f32.mrf.mxu1  ;;  %v3122_v2 = vpop.eup %3121  ;;  %v2573_v11 = vadd.f32 -2.0, %v807_v0 }
 0x170   : > { %v1214_v3 = vpack.c.bf16 %v2572_v63, %v2568_v61  ;;  %v809_v4 = vpop.f32.mrf.mxu0  ;;  %v1370_v6 = vmul.bf16 1069105081, %v1213_v62  ;;  %v2575_v14 = vadd.f32 -2.0, %v1000_v40 }
 0x171   : > { %v3124_v5 = vpop.eup %3123  ;;  %v1367_v7 = vmul.bf16 1069105081, %v1212_v47  ;;  %v1002_v8 = vpop.f32.mrf.mxu1  ;;  %3137 = vpow.bf16 %v1364_v1  ;;  %v2574_v17 = vadd.f32 -2.0, %v809_v4 }
 0x172   : > { %v3126_v44 = vpop.eup %3125  ;;  %v1373_v48 = vmul.bf16 1069105081, %v1214_v3  ;;  %v811_v9 = vpop.f32.mrf.mxu0  ;;  %1527 = vmatprep.mubr.bf16.mxu0 %v3124_v5  ;;  %v2576_v21 = vadd.f32 -2.0, %v1002_v8 }
 0x173   : > { %v3128_v10 = vpop.eup %3127  ;;  %3139 = vpow.bf16 %v1367_v7  ;;  %v2577_v12 = vadd.f32 -2.0, %v811_v9  ;;  %v1004_v13 = vpop.f32.mrf.mxu1  ;;  %1688 = vmatprep.mubr.bf16.mxu1 %v3126_v44  ;;  %1528 = vmatmul.mubr.bf16.gmra.mxu0 %v3122_v2 }
 0x174   : > { %3141 = vpow.bf16 %v1373_v48  ;;  %v2579_v15 = vadd.f32 -2.0, %v1004_v13  ;;  %1689 = vmatmul.mubr.bf16.gmra.mxu1 %v3128_v10  ;;  %v813_v16 = vpop.f32.mrf.mxu0 }
 0x175   : > { %3143 = vpow.bf16 %v1370_v6  ;;  %v1215_v18 = vpack.c.bf16 %v2577_v12, %v2573_v11  ;;  %v2578_v19 = vadd.f32 -2.0, %v813_v16  ;;  %v1006_v20 = vpop.f32.mrf.mxu1 }
 0x176   : > { %v1217_v22 = vpack.c.bf16 %v2579_v15, %v2575_v14  ;;  %v2580_v23 = vadd.f32 -2.0, %v1006_v20  ;;  %v817_v24 = vpop.f32.mrf.mxu0 }
 0x177   : > { %v1376_v25 = vmul.bf16 1069105081, %v1215_v18  ;;  %v1216_v45 = vpack.c.bf16 %v2578_v19, %v2574_v17  ;;  %v1010_v26 = vpop.f32.mrf.mxu1  ;;  %v3130_v27 = vpop.eup %3129  ;;  %v2581_v36 = vadd.f32 -2.0, %v817_v24 }
 0x178   : > { %v1218_v28 = vpack.c.bf16 %v2580_v23, %v2576_v21  ;;  %v819_v29 = vpop.f32.mrf.mxu0  ;;  %v1382_v30 = vmul.bf16 1069105081, %v1217_v22  ;;  %v2583_v39 = vadd.f32 -2.0, %v1010_v26 }
 0x179   : > { %v3132_v41 = vpop.eup %3131  ;;  %v1379_v31 = vmul.bf16 1069105081, %v1216_v45  ;;  %v1012_v46 = vpop.f32.mrf.mxu1  ;;  %3145 = vpow.bf16 %v1376_v25  ;;  %v2582_v51 = vadd.f32 -2.0, %v819_v29 }
 0x17a   : > { %v3134_v32 = vpop.eup %3133  ;;  %v1385_v33 = vmul.bf16 1069105081, %v1218_v28  ;;  %v821_v34 = vpop.f32.mrf.mxu0  ;;  %1535 = vmatprep.mubr.bf16.mxu0 %v3132_v41  ;;  %v2584_v54 = vadd.f32 -2.0, %v1012_v46 }
 0x17b   : > { %v3136_v35 = vpop.eup %3135  ;;  %3147 = vpow.bf16 %v1379_v31  ;;  %v2585_v37 = vadd.f32 -2.0, %v821_v34  ;;  %v1014_v38 = vpop.f32.mrf.mxu1  ;;  %1696 = vmatprep.mubr.bf16.mxu1 %v3134_v32  ;;  %1536 = vmatmul.mubr.bf16.gmra.mxu0 %v3130_v27 }
 0x17c   : > { %3149 = vpow.bf16 %v1385_v33  ;;  %v2587_v49 = vadd.f32 -2.0, %v1014_v38  ;;  %1697 = vmatmul.mubr.bf16.gmra.mxu1 %v3136_v35  ;;  %v823_v50 = vpop.f32.mrf.mxu0 }
 0x17d   : > { %3151 = vpow.bf16 %v1382_v30  ;;  %v1219_v42 = vpack.c.bf16 %v2585_v37, %v2581_v36  ;;  %v2586_v52 = vadd.f32 -2.0, %v823_v50  ;;  %v1016_v53 = vpop.f32.mrf.mxu1 }
 0x17e   : > { %v1221_v55 = vpack.c.bf16 %v2587_v49, %v2583_v39  ;;  %v2588_v43 = vadd.f32 -2.0, %v1016_v53  ;;  %v827_v56 = vpop.f32.mrf.mxu0 }
 0x17f   : > { %v1388_v57 = vmul.bf16 1069105081, %v1219_v42  ;;  %v1220_v58 = vpack.c.bf16 %v2586_v52, %v2582_v51  ;;  %v1020_v59 = vpop.f32.mrf.mxu1  ;;  %v3138_v60 = vpop.eup %3137  ;;  %v2589_v5 = vadd.f32 -2.0, %v827_v56 }
 0x180   : > { %v1222_v61 = vpack.c.bf16 %v2588_v43, %v2584_v54  ;;  %v829_v62 = vpop.f32.mrf.mxu0  ;;  %v1394_v0 = vmul.bf16 1069105081, %v1221_v55  ;;  %v2591_v8 = vadd.f32 -2.0, %v1020_v59 }
 0x181   : > { %v3140_v63 = vpop.eup %3139  ;;  %v1391_v1 = vmul.bf16 1069105081, %v1220_v58  ;;  %v1022_v47 = vpop.f32.mrf.mxu1  ;;  %3153 = vpow.bf16 %v1388_v57  ;;  %v2590_v9 = vadd.f32 -2.0, %v829_v62 }
 0x182   : > { %v3142_v40 = vpop.eup %3141  ;;  %v1397_v2 = vmul.bf16 1069105081, %v1222_v61  ;;  %v831_v3 = vpop.f32.mrf.mxu0  ;;  %1543 = vmatprep.mubr.bf16.mxu0 %v3140_v63  ;;  %v2592_v13 = vadd.f32 -2.0, %v1022_v47 }
 0x183   : > { %v3144_v4 = vpop.eup %3143  ;;  %3155 = vpow.bf16 %v1391_v1  ;;  %v2593_v6 = vadd.f32 -2.0, %v831_v3  ;;  %v1024_v7 = vpop.f32.mrf.mxu1  ;;  %1704 = vmatprep.mubr.bf16.mxu1 %v3142_v40  ;;  %1544 = vmatmul.mubr.bf16.gmra.mxu0 %v3138_v60 }
 0x184   : > { %3157 = vpow.bf16 %v1397_v2  ;;  %v2595_v44 = vadd.f32 -2.0, %v1024_v7  ;;  %1705 = vmatmul.mubr.bf16.gmra.mxu1 %v3144_v4  ;;  %v833_v48 = vpop.f32.mrf.mxu0  ;;  %v1910_v47 = vpop.xlane.xlu0 %1909 }
 0x185   : > { %3159 = vpow.bf16 %v1394_v0  ;;  %v1223_v10 = vpack.c.bf16 %v2593_v6, %v2589_v5  ;;  %v2594_v11 = vadd.f32 -2.0, %v833_v48  ;;  %v1026_v12 = vpop.f32.mrf.mxu1  ;;  %v2605_v40 = vadd.f32 -2.0, %v1910_v47  ;;  %v1914_v3 = vpop.xlane.xlu1 %1913 }
 0x186   : > { %v1225_v14 = vpack.c.bf16 %v2595_v44, %v2591_v8  ;;  %v2596_v15 = vadd.f32 -2.0, %v1026_v12  ;;  %v837_v16 = vpop.f32.mrf.mxu0  ;;  %v2607_v48 = vadd.f32 -2.0, %v1914_v3 }
 0x187   : > { %v1400_v17 = vmul.bf16 1069105081, %v1223_v10  ;;  %v1224_v18 = vpack.c.bf16 %v2594_v11, %v2590_v9  ;;  %v1030_v19 = vpop.f32.mrf.mxu1  ;;  %v3146_v20 = vpop.eup %3145  ;;  %v2597_v41 = vadd.f32 -2.0, %v837_v16  ;;  %v2037_v4 = vmul.f32 1.442695, %v2605_v40 }
 0x188   : > { %v1226_v21 = vpack.c.bf16 %v2596_v15, %v2592_v13  ;;  %v839_v22 = vpop.f32.mrf.mxu0  ;;  %v1406_v24 = vmul.bf16 1069105081, %v1225_v14  ;;  %v2599_v46 = vadd.f32 -2.0, %v1030_v19  ;;  %v1912_v2 = vpop.xlane.xlu0 %1911  ;;  %v1745_v14 = vld [vmem:[#allocation2] sm:$0xff] }
 0x189   : > { %v3148_v23 = vpop.eup %3147  ;;  %v1403_v25 = vmul.bf16 1069105081, %v1224_v18  ;;  %v1032_v45 = vpop.f32.mrf.mxu1  ;;  %3161 = vpow.bf16 %v1400_v17  ;;  %v2598_v34 = vadd.f32 -2.0, %v839_v22  ;;  %v2606_v5 = vadd.f32 -2.0, %v1912_v2 }
 0x18a   : > { %v3150_v26 = vpop.eup %3149  ;;  %v1409_v27 = vmul.bf16 1069105081, %v1226_v21  ;;  %v841_v28 = vpop.f32.mrf.mxu0  ;;  %1551 = vmatprep.mubr.bf16.mxu0 %v3148_v23  ;;  %v2600_v38 = vadd.f32 -2.0, %v1032_v45  ;;  %v2041_v17 = vmul.f32 1.442695, %v2607_v48  ;;  %v1746_v45 = vld [vmem:[#allocation2 + $0x8] sm:$0xff] }
 0x18b   : > { %v3152_v29 = vpop.eup %3151  ;;  %3163 = vpow.bf16 %v1403_v25  ;;  %v2601_v30 = vadd.f32 -2.0, %v841_v28  ;;  %v1034_v31 = vpop.f32.mrf.mxu1  ;;  %1712 = vmatprep.mubr.bf16.mxu1 %v3150_v26  ;;  %1552 = vmatmul.mubr.bf16.gmra.mxu0 %v3146_v20  ;;  %v2039_v8 = vmul.f32 1.442695, %v2606_v5  ;;  %v1749_v5 = vld [vmem:[#allocation2 + $0x20] sm:$0xff] }
 0x18c   : > { %3165 = vpow.bf16 %v1409_v27  ;;  %v2603_v32 = vadd.f32 -2.0, %v1034_v31  ;;  %1713 = vmatmul.mubr.bf16.gmra.mxu1 %v3152_v29  ;;  %v843_v33 = vpop.f32.mrf.mxu0  ;;  %v1916_v11 = vpop.xlane.xlu1 %1915 }
 0x18d   : > { %3167 = vpow.bf16 %v1406_v24  ;;  %v1227_v35 = vpack.c.bf16 %v2601_v30, %v2597_v41  ;;  %v2602_v36 = vadd.f32 -2.0, %v843_v33  ;;  %v1036_v37 = vpop.f32.mrf.mxu1  ;;  %v2608_v19 = vadd.f32 -2.0, %v1916_v11  ;;  %v1918_v22 = vpop.xlane.xlu0 %1917 }
 0x18e   : > { %v1229_v39 = vpack.c.bf16 %v2603_v32, %v2599_v46  ;;  %v2604_v49 = vadd.f32 -2.0, %v1036_v37  ;;  %v2609_v41 = vadd.f32 -2.0, %v1918_v22 }
 0x18f   : > { %v1412_v50 = vmul.bf16 1069105081, %v1227_v35  ;;  %v1228_v51 = vpack.c.bf16 %v2602_v36, %v2598_v34  ;;  %v3154_v42 = vpop.eup %3153  ;;  %v2043_v28 = vmul.f32 1.442695, %v2608_v19  ;;  %v1747_v35 = vld [vmem:[#allocation2 + $0x10] sm:$0xff] }
 0x190   : > { %v1230_v52 = vpack.c.bf16 %v2604_v49, %v2600_v38  ;;  %v1418_v54 = vmul.bf16 1069105081, %v1229_v39  ;;  %v1920_v46 = vpop.xlane.xlu1 %1919  ;;  %v2045_v38 = vmul.f32 1.442695, %v2609_v41 }
 0x191   : > { %v3156_v53 = vpop.eup %3155  ;;  %v1415_v55 = vmul.bf16 1069105081, %v1228_v51  ;;  %3169 = vpow.bf16 %v1412_v50  ;;  %v2610_v49 = vadd.f32 -2.0, %v1920_v46  ;;  %v1922_v50 = vpop.xlane.xlu0 %1921 }
 0x192   : > { %v3158_v43 = vpop.eup %3157  ;;  %v1421_v56 = vmul.bf16 1069105081, %v1230_v52  ;;  %1559 = vmatprep.mubr.bf16.mxu0 %v3156_v53 }
 0x193   : > { %v3160_v57 = vpop.eup %3159  ;;  %3171 = vpow.bf16 %v1415_v55  ;;  %1720 = vmatprep.mubr.bf16.mxu1 %v3158_v43  ;;  %1560 = vmatmul.mubr.bf16.gmra.mxu0 %v3154_v42 }
 0x194   : > { %3173 = vpow.bf16 %v1421_v56  ;;  %1721 = vmatmul.mubr.bf16.gmra.mxu1 %v3160_v57  ;;  %v1748_v56 = vld [vmem:[#allocation2 + $0x18] sm:$0xff]  ;;  %v1924_v47 = vpop.xlane.xlu1 %1923 }
 0x195   : > { %3175 = vpow.bf16 %v1418_v54 }
 0x196   : > { %3177 = vpow2.f32 %v2037_v4 }
 0x197   : > { %v3162_v58 = vpop.eup %3161  ;;  %3179 = vpow2.f32 %v2039_v8 }
 0x198   : > { %3181 = vpow2.f32 %v2041_v17 }
 0x199   : > { %v3164_v59 = vpop.eup %3163  ;;  %3183 = vpow2.f32 %v2043_v28 }
 0x19a   : > { %v3166_v60 = vpop.eup %3165  ;;  %1567 = vmatprep.mubr.bf16.mxu0 %v3164_v59  ;;  %3185 = vpow2.f32 %v2045_v38 }
 0x19b   : > { %v3168_v61 = vpop.eup %3167  ;;  %1728 = vmatprep.mubr.bf16.mxu1 %v3166_v60  ;;  %1568 = vmatmul.mubr.bf16.gmra.mxu0 %v3162_v58  ;;  %v2611_v58 = vadd.f32 -2.0, %v1922_v50 }
 0x19c   : > { %1729 = vmatmul.mubr.bf16.gmra.mxu1 %v3168_v61  ;;  %v2047_v61 = vmul.f32 1.442695, %v2610_v49 }
 0x19f   : > { %v3170_v62 = vpop.eup %3169 }
 0x1a1   : > { %v3172_v63 = vpop.eup %3171 }
 0x1a2   : > { %v3174_v0 = vpop.eup %3173  ;;  %1575 = vmatprep.mubr.bf16.mxu0 %v3172_v63 }
 0x1a3   : > { %v3176_v1 = vpop.eup %3175  ;;  %1736 = vmatprep.mubr.bf16.mxu1 %v3174_v0  ;;  %1576 = vmatmul.mubr.bf16.gmra.mxu0 %v3170_v62 }
 0x1a4   : > { %1737 = vmatmul.mubr.bf16.gmra.mxu1 %v3176_v1  ;;  %v3178_v51 = vpop.eup %3177 }
 0x1a5   : > { %v3180_v63 = vpop.eup %3179 }
 0x1eb   : > { %v2751_v6 = vpop.f32.mrf.mxu0 }
 0x1ec   : > { %v2863_v7 = vpop.f32.mrf.mxu1 }
 0x1ed   : > { %v2752_v44 = vpop.f32.mrf.mxu0 }
 0x1ee   : > { %v2753_v9 = vadd.f32 %v2752_v44, %v2751_v6  ;;  %v2864_v10 = vpop.f32.mrf.mxu1 }
 0x1ef   : > { %v2865_v12 = vadd.f32 %v2864_v10, %v2863_v7  ;;  %v2754_v13 = vpop.f32.mrf.mxu0  ;;  %v2049_v7 = vmul.f32 1.442695, %v2611_v58  ;;  %v3182_v10 = vpop.eup %3181 }
 0x1f0   : > { %v2866_v15 = vpop.f32.mrf.mxu1 }
 0x1f1   : > { %v1619_v16 = vadd.f32 %v2865_v12, %v2753_v9  ;;  %v2755_v18 = vpop.f32.mrf.mxu0  ;;  %v2612_v9 = vadd.f32 -2.0, %v1924_v47 }
 0x1f2   : > { %v2756_v20 = vadd.f32 %v2755_v18, %v2754_v13  ;;  %v2867_v21 = vpop.f32.mrf.mxu1  ;;  %v1926_v13 = vpop.xlane.xlu0 %1925  ;;  %v1750_v18 = vld [vmem:[#allocation2 + $0x28] sm:$0xff] }
 0x1f3   : > { %v1777_v23 = vadd.f32 %v1745_v14, %v1619_v16  ;;  %v2868_v24 = vadd.f32 %v2867_v21, %v2866_v15  ;;  %v2757_v25 = vpop.f32.mrf.mxu0  ;;  %v2051_v22 = vmul.f32 1.442695, %v2612_v9 }
 0x1f4   : > { %v2869_v26 = vpop.f32.mrf.mxu1 }
 0x1f5   : > { %1810 = vst.msk [vmem:[#allocation2] sm:$0xff] %vm236_vm0, %v1777_v23  ;;  %v1622_v27 = vadd.f32 %v2868_v24, %v2756_v20  ;;  %v2758_v29 = vpop.f32.mrf.mxu0  ;;  %v2613_v24 = vadd.f32 -2.0, %v1926_v13 }
 0x1f6   : > { %v2759_v30 = vadd.f32 %v2758_v29, %v2757_v25  ;;  %v2870_v31 = vpop.f32.mrf.mxu1  ;;  %v1928_v25 = vpop.xlane.xlu1 %1927 }
 0x1f7   : > { %v1778_v32 = vadd.f32 %v1746_v45, %v1622_v27  ;;  %v2871_v33 = vadd.f32 %v2870_v31, %v2869_v26  ;;  %v2760_v34 = vpop.f32.mrf.mxu0  ;;  %v3184_v45 = vpop.eup %3183  ;;  %v1751_v31 = vld [vmem:[#allocation2 + $0x30] sm:$0xff] }
 0x1f8   : > { %v2872_v36 = vpop.f32.mrf.mxu1  ;;  %v3186_v38 = vpop.eup %3185 }
 0x1f9   : > { %1811 = vst.msk [vmem:[#allocation2 + $0x8] sm:$0xff] %vm236_vm0, %v1778_v32  ;;  %v1627_v37 = vadd.f32 %v2871_v33, %v2759_v30  ;;  %v2761_v39 = vpop.f32.mrf.mxu0  ;;  %v2614_v32 = vadd.f32 -2.0, %v1928_v25 }
 0x1fa   : > { %v2762_v42 = vadd.f32 %v2761_v39, %v2760_v34  ;;  %v2873_v52 = vpop.f32.mrf.mxu1 }
 0x1fb   : > { %v1779_v53 = vadd.f32 %v1747_v35, %v1627_v37  ;;  %v2874_v54 = vadd.f32 %v2873_v52, %v2872_v36  ;;  %v2763_v55 = vpop.f32.mrf.mxu0  ;;  %v2053_v35 = vmul.f32 1.442695, %v2613_v24  ;;  %v1930_v37 = vpop.xlane.xlu0 %1929  ;;  %v1754_v24 = vld [vmem:[#allocation2 + $0x48] sm:$0xff] }
 0x1fc   : > { %v1973_v43 = vld [vmem:[#allocation2] sm:$0xff]  ;;  %v2875_v57 = vpop.f32.mrf.mxu1 }
 0x1fd   : > { %v2101_v59 = vsub.f32 %v1973_v43, %v3178_v51  ;;  %1812 = vst.msk [vmem:[#allocation2 + $0x10] sm:$0xff] %vm236_vm0, %v1779_v53  ;;  %v1630_v60 = vadd.f32 %v2874_v54, %v2762_v42  ;;  %v2764_v62 = vpop.f32.mrf.mxu0  ;;  %v1752_v54 = vld [vmem:[#allocation2 + $0x38] sm:$0xff]  ;;  %v2055_v43 = vmul.f32 1.442695, %v2614_v32  ;;  %v2231_v32 = vld [vmem:[%s3664_s19 + $0x10] sm:$0xff] }
 0x1fe   : > { %v2765_v0 = vadd.f32 %v2764_v62, %v2763_v55  ;;  %v2876_v1 = vpop.f32.mrf.mxu1 }
 0x1ff   : > { %3187 = vlog2.f32 %v2101_v59  ;;  %v1780_v40 = vadd.f32 %v1748_v56, %v1630_v60  ;;  %v2877_v2 = vadd.f32 %v2876_v1, %v2875_v57  ;;  %v2766_v3 = vpop.f32.mrf.mxu0  ;;  %v2615_v56 = vadd.f32 -2.0, %v1930_v37 }
 0x200   : > { %v1974_v4 = vld [vmem:[#allocation2 + $0x8] sm:$0xff]  ;;  %v2878_v6 = vpop.f32.mrf.mxu1  ;;  %3189 = vpow2.f32 %v2047_v61  ;;  %v1932_v61 = vpop.xlane.xlu1 %1931 }
 0x201   : > { %v2102_v8 = vsub.f32 %v1974_v4, %v3180_v63  ;;  %1813 = vst.msk [vmem:[#allocation2 + $0x18] sm:$0xff] %vm236_vm0, %v1780_v40  ;;  %v1635_v44 = vadd.f32 %v2877_v2, %v2765_v0  ;;  %v2767_v48 = vpop.f32.mrf.mxu0  ;;  %v2229_v63 = vld [vmem:[%s3664_s19] sm:$0xff] }
 0x202   : > { %v2768_v11 = vadd.f32 %v2767_v48, %v2766_v3  ;;  %v2879_v12 = vpop.f32.mrf.mxu1 }
 0x203   : > { %3191 = vlog2.f32 %v2102_v8  ;;  %v1781_v14 = vadd.f32 %v1749_v5, %v1635_v44  ;;  %v2880_v15 = vadd.f32 %v2879_v12, %v2878_v6  ;;  %v2769_v16 = vpop.f32.mrf.mxu0  ;;  %v1753_v6 = vld [vmem:[#allocation2 + $0x40] sm:$0xff]  ;;  %v2057_v8 = vmul.f32 1.442695, %v2615_v56 }
 0x204   : > { %v1975_v17 = vld [vmem:[#allocation2 + $0x10] sm:$0xff]  ;;  %3193 = vpow2.f32 %v2049_v7  ;;  %v2881_v19 = vpop.f32.mrf.mxu1  ;;  %v2616_v44 = vadd.f32 -2.0, %v1932_v61 }
 0x205   : > { %v2103_v20 = vsub.f32 %v1975_v17, %v3182_v10  ;;  %1814 = vst.msk [vmem:[#allocation2 + $0x20] sm:$0xff] %vm236_vm0, %v1781_v14  ;;  %v1638_v21 = vadd.f32 %v2880_v15, %v2768_v11  ;;  %v2770_v23 = vpop.f32.mrf.mxu0  ;;  %v1934_v14 = vpop.xlane.xlu0 %1933  ;;  %v2230_v15 = vld [vmem:[%s3664_s19 + $0x8] sm:$0xff] }
 0x206   : > { %v2771_v26 = vadd.f32 %v2770_v23, %v2769_v16  ;;  %v2882_v27 = vpop.f32.mrf.mxu1 }
 0x207   : > { %3195 = vlog2.f32 %v2103_v20  ;;  %v1782_v28 = vadd.f32 %v1750_v18, %v1638_v21  ;;  %v2883_v29 = vadd.f32 %v2882_v27, %v2881_v19  ;;  %v2772_v41 = vpop.f32.mrf.mxu0 }
 0x208   : > { %v1976_v30 = vld [vmem:[#allocation2 + $0x18] sm:$0xff]  ;;  %v2884_v46 = vpop.f32.mrf.mxu1  ;;  %3197 = vpow2.f32 %v2051_v22 }
 0x209   : > { %v2104_v33 = vsub.f32 %v1976_v30, %v3184_v45  ;;  %1815 = vst.msk [vmem:[#allocation2 + $0x28] sm:$0xff] %vm236_vm0, %v1782_v28  ;;  %v1643_v34 = vadd.f32 %v2883_v29, %v2771_v26  ;;  %v2773_v36 = vpop.f32.mrf.mxu0  ;;  %v2059_v45 = vmul.f32 1.442695, %v2616_v44  ;;  %v2617_v26 = vadd.f32 -2.0, %v1934_v14 }
 0x20a   : > { %v2774_v39 = vadd.f32 %v2773_v36, %v2772_v41  ;;  %v2885_v49 = vpop.f32.mrf.mxu1 }
 0x20b   : > { %3199 = vlog2.f32 %v2104_v33  ;;  %v1783_v50 = vadd.f32 %v1751_v31, %v1643_v34  ;;  %v2886_v51 = vadd.f32 %v2885_v49, %v2884_v46  ;;  %v2775_v42 = vpop.f32.mrf.mxu0  ;;  %v1936_v31 = vpop.xlane.xlu1 %1935 }
 0x20c   : > { %v3188_v52 = vpop.eup %3187  ;;  %v1977_v53 = vld [vmem:[#allocation2 + $0x20] sm:$0xff]  ;;  %v2887_v55 = vpop.f32.mrf.mxu1  ;;  %3201 = vpow2.f32 %v2053_v35 }
 0x20d   : > { %v2134_v57 = vmul.f32 0.6931472, %v3188_v52  ;;  %v2105_v58 = vsub.f32 %v1977_v53, %v3186_v38  ;;  %1816 = vst.msk [vmem:[#allocation2 + $0x30] sm:$0xff] %vm236_vm0, %v1783_v50  ;;  %v1646_v59 = vadd.f32 %v2886_v51, %v2774_v39  ;;  %v2776_v60 = vpop.f32.mrf.mxu0  ;;  %v3190_v62 = vpop.eup %3189  ;;  %v1755_v50 = vld [vmem:[#allocation2 + $0x50] sm:$0xff]  ;;  %v2618_v52 = vadd.f32 -2.0, %v1936_v31 }
 0x20e   : > { %v2777_v0 = vadd.f32 %v2776_v60, %v2775_v42  ;;  %v2888_v1 = vpop.f32.mrf.mxu1  ;;  %v2061_v42 = vmul.f32 1.442695, %v2617_v26 }
 0x20f   : > { %v2197_v47 = vadd.f32 2.0, %v2134_v57  ;;  %3203 = vlog2.f32 %v2105_v58  ;;  %v1784_v40 = vadd.f32 %v1752_v54, %v1646_v59  ;;  %v2889_v2 = vadd.f32 %v2888_v1, %v2887_v55  ;;  %v2778_v3 = vpop.f32.mrf.mxu0  ;;  %v1938_v57 = vpop.xlane.xlu0 %1937  ;;  %v2232_v59 = vld [vmem:[%s3664_s19 + $0x18] sm:$0xff] }
 0x210   : > { %v3192_v4 = vpop.eup %3191  ;;  %v1978_v5 = vld [vmem:[#allocation2 + $0x28] sm:$0xff]  ;;  %3205 = vpow2.f32 %v2055_v43  ;;  %v2890_v7 = vpop.f32.mrf.mxu1 }
 0x211   : > { %v3194_v48 = vpop.eup %3193  ;;  %v2261_v9 = vsub.f32 %v2197_v47, %v2229_v63  ;;  %v2136_v10 = vmul.f32 0.6931472, %v3192_v4  ;;  %v2106_v11 = vsub.f32 %v1978_v5, %v3190_v62  ;;  %1817 = vst.msk [vmem:[#allocation2 + $0x38] sm:$0xff] %vm236_vm0, %v1784_v40  ;;  %v1651_v12 = vadd.f32 %v2889_v2, %v2777_v0  ;;  %v2779_v13 = vpop.f32.mrf.mxu0  ;;  %v1756_v2 = vld [vmem:[#allocation2 + $0x58] sm:$0xff] }
 0x212   : > { %v2780_v16 = vadd.f32 %v2779_v13, %v2778_v3  ;;  %v2891_v17 = vpop.f32.mrf.mxu1  ;;  %v2063_v4 = vmul.f32 1.442695, %v2618_v52  ;;  %v2619_v5 = vadd.f32 -2.0, %v1938_v57 }
 0x213   : > { %2293 = vst.msk [vmem:[%s3673_s12] sm:$0xff] %vm236_vm0, %v2261_v9  ;;  %v2198_v18 = vadd.f32 2.0, %v2136_v10  ;;  %3207 = vlog2.f32 %v2106_v11  ;;  %v1785_v19 = vadd.f32 %v1753_v6, %v1651_v12  ;;  %v2892_v20 = vadd.f32 %v2891_v17, %v2890_v7  ;;  %v2781_v21 = vpop.f32.mrf.mxu0  ;;  %v1940_v10 = vpop.xlane.xlu1 %1939  ;;  %v2233_v11 = vld [vmem:[%s3664_s19 + $0x20] sm:$0xff] }
 0x214   : > { %v3196_v22 = vpop.eup %3195  ;;  %v1979_v23 = vld [vmem:[#allocation2 + $0x30] sm:$0xff]  ;;  %3209 = vpow2.f32 %v2057_v8  ;;  %v2893_v25 = vpop.f32.mrf.mxu1 }
 0x215   : > { %v2262_v27 = vsub.f32 %v2198_v18, %v2230_v15  ;;  %v2138_v28 = vmul.f32 0.6931472, %v3196_v22  ;;  %v2107_v29 = vsub.f32 %v1979_v23, %v3194_v48  ;;  %1818 = vst.msk [vmem:[#allocation2 + $0x40] sm:$0xff] %vm236_vm0, %v1785_v19  ;;  %v1654_v41 = vadd.f32 %v2892_v20, %v2780_v16  ;;  %v2782_v30 = vpop.f32.mrf.mxu0  ;;  %v3198_v46 = vpop.eup %3197  ;;  %v1757_v20 = vld [vmem:[#allocation2 + $0x60] sm:$0xff] }
 0x216   : > { %v2783_v33 = vadd.f32 %v2782_v30, %v2781_v21  ;;  %v2894_v34 = vpop.f32.mrf.mxu1  ;;  %v2065_v22 = vmul.f32 1.442695, %v2619_v5  ;;  %v2620_v23 = vadd.f32 -2.0, %v1940_v10 }
 0x217   : > { %2294 = vst.msk [vmem:[%s3673_s12 + $0x8] sm:$0xff] %vm236_vm0, %v2262_v27  ;;  %v2199_v35 = vadd.f32 2.0, %v2138_v28  ;;  %3211 = vlog2.f32 %v2107_v29  ;;  %v1786_v36 = vadd.f32 %v1754_v24, %v1654_v41  ;;  %v2895_v37 = vadd.f32 %v2894_v34, %v2893_v25  ;;  %v2784_v38 = vpop.f32.mrf.mxu0  ;;  %v1942_v29 = vpop.xlane.xlu0 %1941  ;;  %v2234_v41 = vld [vmem:[%s3664_s19 + $0x28] sm:$0xff] }
 0x218   : > { %v3200_v39 = vpop.eup %3199  ;;  %v1980_v49 = vld [vmem:[#allocation2 + $0x38] sm:$0xff]  ;;  %3213 = vpow2.f32 %v2059_v45  ;;  %v2896_v51 = vpop.f32.mrf.mxu1 }
 0x219   : > { %v2263_v53 = vsub.f32 %v2199_v35, %v2231_v32  ;;  %v2140_v54 = vmul.f32 0.6931472, %v3200_v39  ;;  %v2108_v55 = vsub.f32 %v1980_v49, %v3198_v46  ;;  %1819 = vst.msk [vmem:[#allocation2 + $0x48] sm:$0xff] %vm236_vm0, %v1786_v36  ;;  %v1659_v43 = vadd.f32 %v2895_v37, %v2783_v33  ;;  %v2785_v56 = vpop.f32.mrf.mxu0  ;;  %v3202_v58 = vpop.eup %3201  ;;  %v1758_v37 = vld [vmem:[#allocation2 + $0x68] sm:$0xff] }
 0x21a   : > { %v2786_v60 = vadd.f32 %v2785_v56, %v2784_v38  ;;  %v2897_v61 = vpop.f32.mrf.mxu1  ;;  %v2067_v39 = vmul.f32 1.442695, %v2620_v23  ;;  %v2621_v49 = vadd.f32 -2.0, %v1942_v29 }
 0x21b   : > { %2295 = vst.msk [vmem:[%s3673_s12 + $0x10] sm:$0xff] %vm236_vm0, %v2263_v53  ;;  %v2200_v62 = vadd.f32 2.0, %v2140_v54  ;;  %3215 = vlog2.f32 %v2108_v55  ;;  %v1787_v63 = vadd.f32 %v1755_v50, %v1659_v43  ;;  %v2898_v0 = vadd.f32 %v2897_v61, %v2896_v51  ;;  %v2787_v1 = vpop.f32.mrf.mxu0  ;;  %v1944_v55 = vpop.xlane.xlu1 %1943  ;;  %v2235_v43 = vld [vmem:[%s3664_s19 + $0x30] sm:$0xff] }
 0x21c   : > { %v3204_v47 = vpop.eup %3203  ;;  %v1981_v40 = vld [vmem:[#allocation2 + $0x40] sm:$0xff]  ;;  %3217 = vpow2.f32 %v2061_v42  ;;  %v2899_v3 = vpop.f32.mrf.mxu1 }
 0x21d   : > { %v3206_v6 = vpop.eup %3205  ;;  %v2264_v7 = vsub.f32 %v2200_v62, %v2232_v59  ;;  %v2142_v8 = vmul.f32 0.6931472, %v3204_v47  ;;  %v2109_v44 = vsub.f32 %v1981_v40, %v3202_v58  ;;  %1820 = vst.msk [vmem:[#allocation2 + $0x50] sm:$0xff] %vm236_vm0, %v1787_v63  ;;  %v1662_v48 = vadd.f32 %v2898_v0, %v2786_v60  ;;  %v2788_v9 = vpop.f32.mrf.mxu0  ;;  %v1759_v0 = vld [vmem:[#allocation2 + $0x70] sm:$0xff] }
 0x21e   : > { %v2789_v12 = vadd.f32 %v2788_v9, %v2787_v1  ;;  %v2900_v13 = vpop.f32.mrf.mxu1  ;;  %v2069_v47 = vmul.f32 1.442695, %v2621_v49  ;;  %v2622_v40 = vadd.f32 -2.0, %v1944_v55 }
 0x21f   : > { %2296 = vst.msk [vmem:[%s3673_s12 + $0x18] sm:$0xff] %vm236_vm0, %v2264_v7  ;;  %v2201_v14 = vadd.f32 2.0, %v2142_v8  ;;  %3219 = vlog2.f32 %v2109_v44  ;;  %v1788_v15 = vadd.f32 %v1756_v2, %v1662_v48  ;;  %v2901_v16 = vadd.f32 %v2900_v13, %v2899_v3  ;;  %v2790_v17 = vpop.f32.mrf.mxu0  ;;  %v1946_v8 = vpop.xlane.xlu0 %1945  ;;  %v2236_v44 = vld [vmem:[%s3664_s19 + $0x38] sm:$0xff] }
 0x220   : > { %v3208_v18 = vpop.eup %3207  ;;  %v1982_v19 = vld [vmem:[#allocation2 + $0x48] sm:$0xff]  ;;  %3221 = vpow2.f32 %v2063_v4  ;;  %v2902_v21 = vpop.f32.mrf.mxu1 }
 0x221   : > { %v3210_v24 = vpop.eup %3209  ;;  %v2265_v25 = vsub.f32 %v2201_v14, %v2233_v11  ;;  %v2144_v45 = vmul.f32 0.6931472, %v3208_v18  ;;  %v2110_v26 = vsub.f32 %v1982_v19, %v3206_v6  ;;  %1821 = vst.msk [vmem:[#allocation2 + $0x58] sm:$0xff] %vm236_vm0, %v1788_v15  ;;  %v1667_v27 = vadd.f32 %v2901_v16, %v2789_v12  ;;  %v2791_v28 = vpop.f32.mrf.mxu0  ;;  %v1760_v16 = vld [vmem:[#allocation2 + $0x78] sm:$0xff] }
 0x222   : > { %v2792_v30 = vadd.f32 %v2791_v28, %v2790_v17  ;;  %v2903_v31 = vpop.f32.mrf.mxu1  ;;  %v2071_v18 = vmul.f32 1.442695, %v2622_v40  ;;  %v2623_v19 = vadd.f32 -2.0, %v1946_v8 }
 0x223   : > { %2297 = vst.msk [vmem:[%s3673_s12 + $0x20] sm:$0xff] %vm236_vm0, %v2265_v25  ;;  %v2202_v46 = vadd.f32 2.0, %v2144_v45  ;;  %3223 = vlog2.f32 %v2110_v26  ;;  %v1789_v32 = vadd.f32 %v1757_v20, %v1667_v27  ;;  %v2904_v33 = vadd.f32 %v2903_v31, %v2902_v21  ;;  %v2793_v34 = vpop.f32.mrf.mxu0  ;;  %v1948_v45 = vpop.xlane.xlu1 %1947  ;;  %v2237_v26 = vld [vmem:[%s3664_s19 + $0x40] sm:$0xff] }
 0x224   : > { %v3212_v35 = vpop.eup %3211  ;;  %v1983_v36 = vld [vmem:[#allocation2 + $0x50] sm:$0xff]  ;;  %3225 = vpow2.f32 %v2065_v22  ;;  %v2905_v38 = vpop.f32.mrf.mxu1 }
 0x225   : > { %v3214_v50 = vpop.eup %3213  ;;  %v2266_v51 = vsub.f32 %v2202_v46, %v2234_v41  ;;  %v2146_v42 = vmul.f32 0.6931472, %v3212_v35  ;;  %v2111_v52 = vsub.f32 %v1983_v36, %v3210_v24  ;;  %1822 = vst.msk [vmem:[#allocation2 + $0x60] sm:$0xff] %vm236_vm0, %v1789_v32  ;;  %v1670_v53 = vadd.f32 %v2904_v33, %v2792_v30  ;;  %v2794_v54 = vpop.f32.mrf.mxu0  ;;  %v1761_v33 = vld [vmem:[#allocation2 + $0x80] sm:$0xff] }
 0x226   : > { %v2795_v56 = vadd.f32 %v2794_v54, %v2793_v34  ;;  %v2906_v57 = vpop.f32.mrf.mxu1  ;;  %v2073_v35 = vmul.f32 1.442695, %v2623_v19  ;;  %v2624_v36 = vadd.f32 -2.0, %v1948_v45 }
 0x227   : > { %2298 = vst.msk [vmem:[%s3673_s12 + $0x28] sm:$0xff] %vm236_vm0, %v2266_v51  ;;  %v2203_v58 = vadd.f32 2.0, %v2146_v42  ;;  %3227 = vlog2.f32 %v2111_v52  ;;  %v1790_v59 = vadd.f32 %v1758_v37, %v1670_v53  ;;  %v2907_v60 = vadd.f32 %v2906_v57, %v2905_v38  ;;  %v2796_v61 = vpop.f32.mrf.mxu0  ;;  %v1950_v42 = vpop.xlane.xlu0 %1949  ;;  %v2238_v52 = vld [vmem:[%s3664_s19 + $0x48] sm:$0xff] }
 0x228   : > { %v3216_v62 = vpop.eup %3215  ;;  %v1984_v63 = vld [vmem:[#allocation2 + $0x58] sm:$0xff]  ;;  %3229 = vpow2.f32 %v2067_v39  ;;  %v2908_v1 = vpop.f32.mrf.mxu1 }
 0x229   : > { %v3218_v2 = vpop.eup %3217  ;;  %v2267_v3 = vsub.f32 %v2203_v58, %v2235_v43  ;;  %v2148_v4 = vmul.f32 0.6931472, %v3216_v62  ;;  %v2112_v5 = vsub.f32 %v1984_v63, %v3214_v50  ;;  %1823 = vst.msk [vmem:[#allocation2 + $0x68] sm:$0xff] %vm236_vm0, %v1790_v59  ;;  %v1675_v6 = vadd.f32 %v2907_v60, %v2795_v56  ;;  %v2797_v7 = vpop.f32.mrf.mxu0  ;;  %v1762_v60 = vld [vmem:[#allocation2 + $0x88] sm:$0xff] }
 0x22a   : > { %v2798_v48 = vadd.f32 %v2797_v7, %v2796_v61  ;;  %v2909_v9 = vpop.f32.mrf.mxu1  ;;  %v2075_v62 = vmul.f32 1.442695, %v2624_v36  ;;  %v2625_v63 = vadd.f32 -2.0, %v1950_v42 }
 0x22b   : > { %2299 = vst.msk [vmem:[%s3673_s12 + $0x30] sm:$0xff] %vm236_vm0, %v2267_v3  ;;  %v2204_v10 = vadd.f32 2.0, %v2148_v4  ;;  %3231 = vlog2.f32 %v2112_v5  ;;  %v1791_v11 = vadd.f32 %v1759_v0, %v1675_v6  ;;  %v2910_v12 = vadd.f32 %v2909_v9, %v2908_v1  ;;  %v2799_v13 = vpop.f32.mrf.mxu0  ;;  %v1952_v4 = vpop.xlane.xlu1 %1951  ;;  %v2239_v5 = vld [vmem:[%s3664_s19 + $0x50] sm:$0xff] }
 0x22c   : > { %v3220_v14 = vpop.eup %3219  ;;  %v1985_v15 = vld [vmem:[#allocation2 + $0x60] sm:$0xff]  ;;  %3233 = vpow2.f32 %v2069_v47  ;;  %v2911_v17 = vpop.f32.mrf.mxu1 }
 0x22d   : > { %v3222_v20 = vpop.eup %3221  ;;  %v2268_v21 = vsub.f32 %v2204_v10, %v2236_v44  ;;  %v2150_v22 = vmul.f32 0.6931472, %v3220_v14  ;;  %v2113_v23 = vsub.f32 %v1985_v15, %v3218_v2  ;;  %1824 = vst.msk [vmem:[#allocation2 + $0x70] sm:$0xff] %vm236_vm0, %v1791_v11  ;;  %v1678_v24 = vadd.f32 %v2910_v12, %v2798_v48  ;;  %v2800_v25 = vpop.f32.mrf.mxu0  ;;  %v1763_v12 = vld [vmem:[#allocation2 + $0x90] sm:$0xff] }
 0x22e   : > { %v2801_v27 = vadd.f32 %v2800_v25, %v2799_v13  ;;  %v2912_v28 = vpop.f32.mrf.mxu1  ;;  %v2077_v14 = vmul.f32 1.442695, %v2625_v63  ;;  %v2626_v15 = vadd.f32 -2.0, %v1952_v4 }
 0x22f   : > { %2300 = vst.msk [vmem:[%s3673_s12 + $0x38] sm:$0xff] %vm236_vm0, %v2268_v21  ;;  %v2205_v29 = vadd.f32 2.0, %v2150_v22  ;;  %3235 = vlog2.f32 %v2113_v23  ;;  %v1792_v41 = vadd.f32 %v1760_v16, %v1678_v24  ;;  %v2913_v30 = vadd.f32 %v2912_v28, %v2911_v17  ;;  %v2802_v31 = vpop.f32.mrf.mxu0  ;;  %v1954_v22 = vpop.xlane.xlu0 %1953  ;;  %v2240_v23 = vld [vmem:[%s3664_s19 + $0x58] sm:$0xff] }
 0x230   : > { %v3224_v46 = vpop.eup %3223  ;;  %v1986_v32 = vld [vmem:[#allocation2 + $0x68] sm:$0xff]  ;;  %3237 = vpow2.f32 %v2071_v18  ;;  %v2914_v34 = vpop.f32.mrf.mxu1 }
 0x231   : > { %v3226_v37 = vpop.eup %3225  ;;  %v2269_v38 = vsub.f32 %v2205_v29, %v2237_v26  ;;  %v2152_v39 = vmul.f32 0.6931472, %v3224_v46  ;;  %v2114_v49 = vsub.f32 %v1986_v32, %v3222_v20  ;;  %1825 = vst.msk [vmem:[#allocation2 + $0x78] sm:$0xff] %vm236_vm0, %v1792_v41  ;;  %v1683_v50 = vadd.f32 %v2913_v30, %v2801_v27  ;;  %v2803_v51 = vpop.f32.mrf.mxu0  ;;  %v1764_v30 = vld [vmem:[#allocation2 + $0x98] sm:$0xff] }
 0x232   : > { %v2804_v53 = vadd.f32 %v2803_v51, %v2802_v31  ;;  %v2915_v54 = vpop.f32.mrf.mxu1  ;;  %v2079_v46 = vmul.f32 1.442695, %v2626_v15  ;;  %v2627_v32 = vadd.f32 -2.0, %v1954_v22 }
 0x233   : > { %2301 = vst.msk [vmem:[%s3673_s12 + $0x40] sm:$0xff] %vm236_vm0, %v2269_v38  ;;  %v2206_v55 = vadd.f32 2.0, %v2152_v39  ;;  %3239 = vlog2.f32 %v2114_v49  ;;  %v1793_v43 = vadd.f32 %v1761_v33, %v1683_v50  ;;  %v2916_v56 = vadd.f32 %v2915_v54, %v2914_v34  ;;  %v2805_v57 = vpop.f32.mrf.mxu0  ;;  %v1956_v39 = vpop.xlane.xlu1 %1955  ;;  %v2241_v49 = vld [vmem:[%s3664_s19 + $0x60] sm:$0xff] }
 0x234   : > { %v3228_v58 = vpop.eup %3227  ;;  %v1987_v59 = vld [vmem:[#allocation2 + $0x70] sm:$0xff]  ;;  %3241 = vpow2.f32 %v2073_v35  ;;  %v2917_v61 = vpop.f32.mrf.mxu1 }
 0x235   : > { %v3230_v0 = vpop.eup %3229  ;;  %v2270_v1 = vsub.f32 %v2206_v55, %v2238_v52  ;;  %v2154_v47 = vmul.f32 0.6931472, %v3228_v58  ;;  %v2115_v40 = vsub.f32 %v1987_v59, %v3226_v37  ;;  %1826 = vst.msk [vmem:[#allocation2 + $0x80] sm:$0xff] %vm236_vm0, %v1793_v43  ;;  %v1686_v2 = vadd.f32 %v2916_v56, %v2804_v53  ;;  %v2806_v3 = vpop.f32.mrf.mxu0  ;;  %v1765_v56 = vld [vmem:[#allocation2 + $0xa0] sm:$0xff] }
 0x236   : > { %v2807_v6 = vadd.f32 %v2806_v3, %v2805_v57  ;;  %v2918_v7 = vpop.f32.mrf.mxu1  ;;  %v2081_v58 = vmul.f32 1.442695, %v2627_v32  ;;  %v2628_v59 = vadd.f32 -2.0, %v1956_v39 }
 0x237   : > { %2302 = vst.msk [vmem:[%s3673_s12 + $0x48] sm:$0xff] %vm236_vm0, %v2270_v1  ;;  %v2207_v8 = vadd.f32 2.0, %v2154_v47  ;;  %3243 = vlog2.f32 %v2115_v40  ;;  %v1794_v44 = vadd.f32 %v1762_v60, %v1686_v2  ;;  %v2919_v48 = vadd.f32 %v2918_v7, %v2917_v61  ;;  %v2808_v9 = vpop.f32.mrf.mxu0  ;;  %v1958_v47 = vpop.xlane.xlu0 %1957  ;;  %v2242_v40 = vld [vmem:[%s3664_s19 + $0x68] sm:$0xff] }
 0x238   : > { %v3232_v10 = vpop.eup %3231  ;;  %v1988_v11 = vld [vmem:[#allocation2 + $0x78] sm:$0xff]  ;;  %3245 = vpow2.f32 %v2075_v62  ;;  %v2920_v13 = vpop.f32.mrf.mxu1 }
 0x239   : > { %v3234_v16 = vpop.eup %3233  ;;  %v2271_v17 = vsub.f32 %v2207_v8, %v2239_v5  ;;  %v2156_v18 = vmul.f32 0.6931472, %v3232_v10  ;;  %v2116_v19 = vsub.f32 %v1988_v11, %v3230_v0  ;;  %1827 = vst.msk [vmem:[#allocation2 + $0x88] sm:$0xff] %vm236_vm0, %v1794_v44  ;;  %v1691_v20 = vadd.f32 %v2919_v48, %v2807_v6  ;;  %v2809_v21 = vpop.f32.mrf.mxu0  ;;  %v1766_v48 = vld [vmem:[#allocation2 + $0xa8] sm:$0xff] }
 0x23a   : > { %v2810_v24 = vadd.f32 %v2809_v21, %v2808_v9  ;;  %v2921_v25 = vpop.f32.mrf.mxu1  ;;  %v2083_v10 = vmul.f32 1.442695, %v2628_v59  ;;  %v2629_v11 = vadd.f32 -2.0, %v1958_v47 }
 0x23b   : > { %2303 = vst.msk [vmem:[%s3673_s12 + $0x50] sm:$0xff] %vm236_vm0, %v2271_v17  ;;  %v2208_v45 = vadd.f32 2.0, %v2156_v18  ;;  %3247 = vlog2.f32 %v2116_v19  ;;  %v1795_v26 = vadd.f32 %v1763_v12, %v1691_v20  ;;  %v2922_v27 = vadd.f32 %v2921_v25, %v2920_v13  ;;  %v2811_v28 = vpop.f32.mrf.mxu0  ;;  %v1960_v18 = vpop.xlane.xlu1 %1959  ;;  %v2243_v19 = vld [vmem:[%s3664_s19 + $0x70] sm:$0xff] }
 0x23c   : > { %v3236_v29 = vpop.eup %3235  ;;  %v1989_v41 = vld [vmem:[#allocation2 + $0x80] sm:$0xff]  ;;  %3249 = vpow2.f32 %v2077_v14  ;;  %v2923_v31 = vpop.f32.mrf.mxu1 }
 0x23d   : > { %v3238_v33 = vpop.eup %3237  ;;  %v2272_v34 = vsub.f32 %v2208_v45, %v2240_v23  ;;  %v2158_v35 = vmul.f32 0.6931472, %v3236_v29  ;;  %v2117_v36 = vsub.f32 %v1989_v41, %v3234_v16  ;;  %1828 = vst.msk [vmem:[#allocation2 + $0x90] sm:$0xff] %vm236_vm0, %v1795_v26  ;;  %v1694_v37 = vadd.f32 %v2922_v27, %v2810_v24  ;;  %v2812_v38 = vpop.f32.mrf.mxu0  ;;  %v1767_v27 = vld [vmem:[#allocation2 + $0xb0] sm:$0xff] }
 0x23e   : > { %v2813_v50 = vadd.f32 %v2812_v38, %v2811_v28  ;;  %v2924_v51 = vpop.f32.mrf.mxu1  ;;  %v2085_v29 = vmul.f32 1.442695, %v2629_v11  ;;  %v2630_v41 = vadd.f32 -2.0, %v1960_v18 }
 0x23f   : > { %2304 = vst.msk [vmem:[%s3673_s12 + $0x58] sm:$0xff] %vm236_vm0, %v2272_v34  ;;  %v2209_v42 = vadd.f32 2.0, %v2158_v35  ;;  %3251 = vlog2.f32 %v2117_v36  ;;  %v1796_v52 = vadd.f32 %v1764_v30, %v1694_v37  ;;  %v2925_v53 = vadd.f32 %v2924_v51, %v2923_v31  ;;  %v2814_v54 = vpop.f32.mrf.mxu0  ;;  %v1962_v35 = vpop.xlane.xlu0 %1961  ;;  %v2244_v36 = vld [vmem:[%s3664_s19 + $0x78] sm:$0xff] }
 0x240   : > { %v3240_v55 = vpop.eup %3239  ;;  %v1990_v43 = vld [vmem:[#allocation2 + $0x88] sm:$0xff]  ;;  %3253 = vpow2.f32 %v2079_v46  ;;  %v2926_v57 = vpop.f32.mrf.mxu1 }
 0x241   : > { %v3242_v60 = vpop.eup %3241  ;;  %v2273_v61 = vsub.f32 %v2209_v42, %v2241_v49  ;;  %v2160_v62 = vmul.f32 0.6931472, %v3240_v55  ;;  %v2118_v63 = vsub.f32 %v1990_v43, %v3238_v33  ;;  %1829 = vst.msk [vmem:[#allocation2 + $0x98] sm:$0xff] %vm236_vm0, %v1796_v52  ;;  %v1699_v0 = vadd.f32 %v2925_v53, %v2813_v50  ;;  %v2815_v1 = vpop.f32.mrf.mxu0  ;;  %v1768_v53 = vld [vmem:[#allocation2 + $0xb8] sm:$0xff] }
 0x242   : > { %v2816_v2 = vadd.f32 %v2815_v1, %v2814_v54  ;;  %v2927_v3 = vpop.f32.mrf.mxu1  ;;  %v2087_v55 = vmul.f32 1.442695, %v2630_v41  ;;  %v2631_v43 = vadd.f32 -2.0, %v1962_v35 }
 0x243   : > { %2305 = vst.msk [vmem:[%s3673_s12 + $0x60] sm:$0xff] %vm236_vm0, %v2273_v61  ;;  %v2210_v4 = vadd.f32 2.0, %v2160_v62  ;;  %3255 = vlog2.f32 %v2118_v63  ;;  %v1797_v5 = vadd.f32 %v1765_v56, %v1699_v0  ;;  %v2928_v6 = vadd.f32 %v2927_v3, %v2926_v57  ;;  %v2817_v7 = vpop.f32.mrf.mxu0  ;;  %v1964_v62 = vpop.xlane.xlu1 %1963  ;;  %v2245_v63 = vld [vmem:[%s3664_s19 + $0x80] sm:$0xff] }
 0x244   : > { %v3244_v8 = vpop.eup %3243  ;;  %v1991_v44 = vld [vmem:[#allocation2 + $0x90] sm:$0xff]  ;;  %3257 = vpow2.f32 %v2081_v58  ;;  %v2929_v9 = vpop.f32.mrf.mxu1 }
 0x245   : > { %v3246_v12 = vpop.eup %3245  ;;  %v2274_v13 = vsub.f32 %v2210_v4, %v2242_v40  ;;  %v2162_v14 = vmul.f32 0.6931472, %v3244_v8  ;;  %v2119_v15 = vsub.f32 %v1991_v44, %v3242_v60  ;;  %1830 = vst.msk [vmem:[#allocation2 + $0xa0] sm:$0xff] %vm236_vm0, %v1797_v5  ;;  %v1702_v16 = vadd.f32 %v2928_v6, %v2816_v2  ;;  %v2818_v17 = vpop.f32.mrf.mxu0  ;;  %v1769_v6 = vld [vmem:[#allocation2 + $0xc0] sm:$0xff] }
 0x246   : > { %v2819_v20 = vadd.f32 %v2818_v17, %v2817_v7  ;;  %v2930_v21 = vpop.f32.mrf.mxu1  ;;  %v2089_v8 = vmul.f32 1.442695, %v2631_v43  ;;  %v2632_v44 = vadd.f32 -2.0, %v1964_v62 }
 0x247   : > { %2306 = vst.msk [vmem:[%s3673_s12 + $0x68] sm:$0xff] %vm236_vm0, %v2274_v13  ;;  %v2211_v22 = vadd.f32 2.0, %v2162_v14  ;;  %3259 = vlog2.f32 %v2119_v15  ;;  %v1798_v23 = vadd.f32 %v1766_v48, %v1702_v16  ;;  %v2931_v24 = vadd.f32 %v2930_v21, %v2929_v9  ;;  %v2820_v25 = vpop.f32.mrf.mxu0  ;;  %v1966_v14 = vpop.xlane.xlu0 %1965  ;;  %v2246_v15 = vld [vmem:[%s3664_s19 + $0x88] sm:$0xff] }
 0x248   : > { %v3248_v45 = vpop.eup %3247  ;;  %v1992_v26 = vld [vmem:[#allocation2 + $0x98] sm:$0xff]  ;;  %3261 = vpow2.f32 %v2083_v10  ;;  %v2932_v28 = vpop.f32.mrf.mxu1 }
 0x249   : > { %v3250_v30 = vpop.eup %3249  ;;  %v2275_v31 = vsub.f32 %v2211_v22, %v2243_v19  ;;  %v2164_v46 = vmul.f32 0.6931472, %v3248_v45  ;;  %v2120_v32 = vsub.f32 %v1992_v26, %v3246_v12  ;;  %1831 = vst.msk [vmem:[#allocation2 + $0xa8] sm:$0xff] %vm236_vm0, %v1798_v23  ;;  %v1707_v33 = vadd.f32 %v2931_v24, %v2819_v20  ;;  %v2821_v34 = vpop.f32.mrf.mxu0  ;;  %v1770_v24 = vld [vmem:[#allocation2 + $0xc8] sm:$0xff] }
 0x24a   : > { %v2822_v37 = vadd.f32 %v2821_v34, %v2820_v25  ;;  %v2933_v38 = vpop.f32.mrf.mxu1  ;;  %v2091_v45 = vmul.f32 1.442695, %v2632_v44  ;;  %v2633_v26 = vadd.f32 -2.0, %v1966_v14 }
 0x24b   : > { %2307 = vst.msk [vmem:[%s3673_s12 + $0x70] sm:$0xff] %vm236_vm0, %v2275_v31  ;;  %v2212_v39 = vadd.f32 2.0, %v2164_v46  ;;  %3263 = vlog2.f32 %v2120_v32  ;;  %v1799_v49 = vadd.f32 %v1767_v27, %v1707_v33  ;;  %v2934_v50 = vadd.f32 %v2933_v38, %v2932_v28  ;;  %v2823_v51 = vpop.f32.mrf.mxu0  ;;  %v1968_v46 = vpop.xlane.xlu1 %1967  ;;  %v2247_v32 = vld [vmem:[%s3664_s19 + $0x90] sm:$0xff] }
 0x24c   : > { %v3252_v42 = vpop.eup %3251  ;;  %v1993_v52 = vld [vmem:[#allocation2 + $0xa0] sm:$0xff]  ;;  %3265 = vpow2.f32 %v2085_v29  ;;  %v2935_v54 = vpop.f32.mrf.mxu1 }
 0x24d   : > { %v3254_v56 = vpop.eup %3253  ;;  %v2276_v57 = vsub.f32 %v2212_v39, %v2244_v36  ;;  %v2166_v58 = vmul.f32 0.6931472, %v3252_v42  ;;  %v2121_v59 = vsub.f32 %v1993_v52, %v3250_v30  ;;  %1832 = vst.msk [vmem:[#allocation2 + $0xb0] sm:$0xff] %vm236_vm0, %v1799_v49  ;;  %v1710_v60 = vadd.f32 %v2934_v50, %v2822_v37  ;;  %v2824_v61 = vpop.f32.mrf.mxu0  ;;  %v1771_v50 = vld [vmem:[#allocation2 + $0xd0] sm:$0xff] }
 0x24e   : > { %v2825_v0 = vadd.f32 %v2824_v61, %v2823_v51  ;;  %v2936_v1 = vpop.f32.mrf.mxu1  ;;  %v2093_v42 = vmul.f32 1.442695, %v2633_v26  ;;  %v2634_v52 = vadd.f32 -2.0, %v1968_v46 }
 0x24f   : > { %2308 = vst.msk [vmem:[%s3673_s12 + $0x78] sm:$0xff] %vm236_vm0, %v2276_v57  ;;  %v2213_v47 = vadd.f32 2.0, %v2166_v58  ;;  %3267 = vlog2.f32 %v2121_v59  ;;  %v1800_v40 = vadd.f32 %v1768_v53, %v1710_v60  ;;  %v2937_v2 = vadd.f32 %v2936_v1, %v2935_v54  ;;  %v2826_v3 = vpop.f32.mrf.mxu0  ;;  %v1970_v58 = vpop.xlane.xlu0 %1969  ;;  %v2248_v59 = vld [vmem:[%s3664_s19 + $0x98] sm:$0xff] }
 0x250   : > { %v3256_v4 = vpop.eup %3255  ;;  %v1994_v5 = vld [vmem:[#allocation2 + $0xa8] sm:$0xff]  ;;  %3269 = vpow2.f32 %v2087_v55  ;;  %v2938_v7 = vpop.f32.mrf.mxu1 }
 0x251   : > { %v3258_v48 = vpop.eup %3257  ;;  %v2277_v9 = vsub.f32 %v2213_v47, %v2245_v63  ;;  %v2168_v10 = vmul.f32 0.6931472, %v3256_v4  ;;  %v2122_v11 = vsub.f32 %v1994_v5, %v3254_v56  ;;  %1833 = vst.msk [vmem:[#allocation2 + $0xb8] sm:$0xff] %vm236_vm0, %v1800_v40  ;;  %v1715_v12 = vadd.f32 %v2937_v2, %v2825_v0  ;;  %v2827_v13 = vpop.f32.mrf.mxu0  ;;  %v1772_v2 = vld [vmem:[#allocation2 + $0xd8] sm:$0xff] }
 0x252   : > { %v2828_v16 = vadd.f32 %v2827_v13, %v2826_v3  ;;  %v2939_v17 = vpop.f32.mrf.mxu1  ;;  %v2095_v4 = vmul.f32 1.442695, %v2634_v52  ;;  %v2635_v5 = vadd.f32 -2.0, %v1970_v58 }
 0x253   : > { %2309 = vst.msk [vmem:[%s3673_s12 + $0x80] sm:$0xff] %vm236_vm0, %v2277_v9  ;;  %v2214_v18 = vadd.f32 2.0, %v2168_v10  ;;  %3271 = vlog2.f32 %v2122_v11  ;;  %v1801_v19 = vadd.f32 %v1769_v6, %v1715_v12  ;;  %v2940_v20 = vadd.f32 %v2939_v17, %v2938_v7  ;;  %v2829_v21 = vpop.f32.mrf.mxu0  ;;  %v1972_v10 = vpop.xlane.xlu1 %1971  ;;  %v2249_v11 = vld [vmem:[%s3664_s19 + $0xa0] sm:$0xff] }
 0x254   : > { %v3260_v22 = vpop.eup %3259  ;;  %v1995_v23 = vld [vmem:[#allocation2 + $0xb0] sm:$0xff]  ;;  %3273 = vpow2.f32 %v2089_v8  ;;  %v2941_v25 = vpop.f32.mrf.mxu1 }
 0x255   : > { %v3262_v27 = vpop.eup %3261  ;;  %v2278_v28 = vsub.f32 %v2214_v18, %v2246_v15  ;;  %v2170_v29 = vmul.f32 0.6931472, %v3260_v22  ;;  %v2123_v41 = vsub.f32 %v1995_v23, %v3258_v48  ;;  %1834 = vst.msk [vmem:[#allocation2 + $0xc0] sm:$0xff] %vm236_vm0, %v1801_v19  ;;  %v1718_v30 = vadd.f32 %v2940_v20, %v2828_v16  ;;  %v2830_v31 = vpop.f32.mrf.mxu0  ;;  %v1773_v20 = vld [vmem:[#allocation2 + $0xe0] sm:$0xff] }
 0x256   : > { %v2831_v33 = vadd.f32 %v2830_v31, %v2829_v21  ;;  %v2942_v34 = vpop.f32.mrf.mxu1  ;;  %v2097_v22 = vmul.f32 1.442695, %v2635_v5  ;;  %v2636_v23 = vadd.f32 -2.0, %v1972_v10 }
 0x257   : > { %2310 = vst.msk [vmem:[%s3673_s12 + $0x88] sm:$0xff] %vm236_vm0, %v2278_v28  ;;  %v2215_v35 = vadd.f32 2.0, %v2170_v29  ;;  %3275 = vlog2.f32 %v2123_v41  ;;  %v1802_v36 = vadd.f32 %v1770_v24, %v1718_v30  ;;  %v2943_v37 = vadd.f32 %v2942_v34, %v2941_v25  ;;  %v2832_v38 = vpop.f32.mrf.mxu0  ;;  %v2250_v29 = vld [vmem:[%s3664_s19 + $0xa8] sm:$0xff] }
 0x258   : > { %v3264_v39 = vpop.eup %3263  ;;  %v1996_v49 = vld [vmem:[#allocation2 + $0xb8] sm:$0xff]  ;;  %3277 = vpow2.f32 %v2091_v45  ;;  %v2944_v51 = vpop.f32.mrf.mxu1 }
 0x259   : > { %v3266_v53 = vpop.eup %3265  ;;  %v2279_v54 = vsub.f32 %v2215_v35, %v2247_v32  ;;  %v2172_v55 = vmul.f32 0.6931472, %v3264_v39  ;;  %v2124_v43 = vsub.f32 %v1996_v49, %v3262_v27  ;;  %1835 = vst.msk [vmem:[#allocation2 + $0xc8] sm:$0xff] %vm236_vm0, %v1802_v36  ;;  %v1723_v56 = vadd.f32 %v2943_v37, %v2831_v33  ;;  %v2833_v57 = vpop.f32.mrf.mxu0  ;;  %v1774_v36 = vld [vmem:[#allocation2 + $0xe8] sm:$0xff] }
 0x25a   : > { %v2834_v60 = vadd.f32 %v2833_v57, %v2832_v38  ;;  %v2945_v61 = vpop.f32.mrf.mxu1  ;;  %v2099_v38 = vmul.f32 1.442695, %v2636_v23 }
 0x25b   : > { %2311 = vst.msk [vmem:[%s3673_s12 + $0x90] sm:$0xff] %vm236_vm0, %v2279_v54  ;;  %v2216_v62 = vadd.f32 2.0, %v2172_v55  ;;  %3279 = vlog2.f32 %v2124_v43  ;;  %v1803_v63 = vadd.f32 %v1771_v50, %v1723_v56  ;;  %v2946_v0 = vadd.f32 %v2945_v61, %v2944_v51  ;;  %v2835_v1 = vpop.f32.mrf.mxu0  ;;  %v1775_v61 = vld [vmem:[#allocation2 + $0xf0] sm:$0xff] }
 0x25c   : > { %v3268_v47 = vpop.eup %3267  ;;  %v1997_v40 = vld [vmem:[#allocation2 + $0xc0] sm:$0xff]  ;;  %3281 = vpow2.f32 %v2093_v42  ;;  %v2947_v3 = vpop.f32.mrf.mxu1 }
 0x25d   : > { %v3270_v6 = vpop.eup %3269  ;;  %v2280_v7 = vsub.f32 %v2216_v62, %v2248_v59  ;;  %v2174_v8 = vmul.f32 0.6931472, %v3268_v47  ;;  %v2125_v44 = vsub.f32 %v1997_v40, %v3266_v53  ;;  %1836 = vst.msk [vmem:[#allocation2 + $0xd0] sm:$0xff] %vm236_vm0, %v1803_v63  ;;  %v1726_v48 = vadd.f32 %v2946_v0, %v2834_v60  ;;  %v2836_v9 = vpop.f32.mrf.mxu0  ;;  %v2251_v53 = vld [vmem:[%s3664_s19 + $0xb0] sm:$0xff] }
 0x25e   : > { %v2837_v12 = vadd.f32 %v2836_v9, %v2835_v1  ;;  %v2948_v13 = vpop.f32.mrf.mxu1  ;;  %v1776_v9 = vld [vmem:[#allocation2 + $0xf8] sm:$0xff] }
 0x25f   : > { %2312 = vst.msk [vmem:[%s3673_s12 + $0x98] sm:$0xff] %vm236_vm0, %v2280_v7  ;;  %v2217_v14 = vadd.f32 2.0, %v2174_v8  ;;  %3283 = vlog2.f32 %v2125_v44  ;;  %v1804_v15 = vadd.f32 %v1772_v2, %v1726_v48  ;;  %v2949_v16 = vadd.f32 %v2948_v13, %v2947_v3  ;;  %v2838_v17 = vpop.f32.mrf.mxu0  ;;  %v2252_v3 = vld [vmem:[%s3664_s19 + $0xb8] sm:$0xff] }
 0x260   : > { %v3272_v18 = vpop.eup %3271  ;;  %v1998_v19 = vld [vmem:[#allocation2 + $0xc8] sm:$0xff]  ;;  %3285 = vpow2.f32 %v2095_v4  ;;  %v2950_v21 = vpop.f32.mrf.mxu1 }
 0x261   : > { %v3274_v24 = vpop.eup %3273  ;;  %v2281_v25 = vsub.f32 %v2217_v14, %v2249_v11  ;;  %v2176_v45 = vmul.f32 0.6931472, %v3272_v18  ;;  %v2126_v26 = vsub.f32 %v1998_v19, %v3270_v6  ;;  %1837 = vst.msk [vmem:[#allocation2 + $0xd8] sm:$0xff] %vm236_vm0, %v1804_v15  ;;  %v1731_v27 = vadd.f32 %v2949_v16, %v2837_v12  ;;  %v2839_v28 = vpop.f32.mrf.mxu0  ;;  %v2253_v15 = vld [vmem:[%s3664_s19 + $0xc0] sm:$0xff] }
 0x262   : > { %v2840_v41 = vadd.f32 %v2839_v28, %v2838_v17  ;;  %v2951_v30 = vpop.f32.mrf.mxu1 }
 0x263   : > { %2313 = vst.msk [vmem:[%s3673_s12 + $0xa0] sm:$0xff] %vm236_vm0, %v2281_v25  ;;  %v2218_v31 = vadd.f32 2.0, %v2176_v45  ;;  %3287 = vlog2.f32 %v2126_v26  ;;  %v1805_v46 = vadd.f32 %v1773_v20, %v1731_v27  ;;  %v2952_v32 = vadd.f32 %v2951_v30, %v2950_v21  ;;  %v2841_v33 = vpop.f32.mrf.mxu0  ;;  %v2255_v30 = vld [vmem:[%s3664_s19 + $0xd0] sm:$0xff] }
 0x264   : > { %v3276_v34 = vpop.eup %3275  ;;  %v1999_v35 = vld [vmem:[#allocation2 + $0xd0] sm:$0xff]  ;;  %3289 = vpow2.f32 %v2097_v22  ;;  %v2953_v37 = vpop.f32.mrf.mxu1 }
 0x265   : > { %v3278_v39 = vpop.eup %3277  ;;  %v2282_v49 = vsub.f32 %v2218_v31, %v2250_v29  ;;  %v2178_v50 = vmul.f32 0.6931472, %v3276_v34  ;;  %v2127_v51 = vsub.f32 %v1999_v35, %v3274_v24  ;;  %1838 = vst.msk [vmem:[#allocation2 + $0xe0] sm:$0xff] %vm236_vm0, %v1805_v46  ;;  %v1734_v42 = vadd.f32 %v2952_v32, %v2840_v41  ;;  %v2842_v52 = vpop.f32.mrf.mxu0  ;;  %v2254_v24 = vld [vmem:[%s3664_s19 + $0xc8] sm:$0xff] }
 0x266   : > { %v2843_v54 = vadd.f32 %v2842_v52, %v2841_v33  ;;  %v2954_v55 = vpop.f32.mrf.mxu1 }
 0x267   : > { %2314 = vst.msk [vmem:[%s3673_s12 + $0xa8] sm:$0xff] %vm236_vm0, %v2282_v49  ;;  %v2219_v43 = vadd.f32 2.0, %v2178_v50  ;;  %3291 = vlog2.f32 %v2127_v51  ;;  %v1806_v56 = vadd.f32 %v1774_v36, %v1734_v42  ;;  %v2955_v57 = vadd.f32 %v2954_v55, %v2953_v37  ;;  %v2844_v58 = vpop.f32.mrf.mxu0  ;;  %v2256_v36 = vld [vmem:[%s3664_s19 + $0xd8] sm:$0xff]  ;;  %v2257_v50 = vld [vmem:[%s3664_s19 + $0xe0] sm:$0xff] }
 0x268   : > { %v3280_v59 = vpop.eup %3279  ;;  %v2000_v60 = vld [vmem:[#allocation2 + $0xd8] sm:$0xff]  ;;  %3293 = vpow2.f32 %v2099_v38  ;;  %v2956_v62 = vpop.f32.mrf.mxu1 }
 0x269   : > { %v3282_v63 = vpop.eup %3281  ;;  %v2283_v0 = vsub.f32 %v2219_v43, %v2251_v53  ;;  %v2180_v1 = vmul.f32 0.6931472, %v3280_v59  ;;  %v2128_v47 = vsub.f32 %v2000_v60, %v3278_v39  ;;  %1839 = vst.msk [vmem:[#allocation2 + $0xe8] sm:$0xff] %vm236_vm0, %v1806_v56  ;;  %v1739_v40 = vadd.f32 %v2955_v57, %v2843_v54  ;;  %v2845_v2 = vpop.f32.mrf.mxu0  ;;  %v2258_v54 = vld [vmem:[%s3664_s19 + $0xe8] sm:$0xff] }
 0x26a   : > { %v2846_v4 = vadd.f32 %v2845_v2, %v2844_v58  ;;  %v2957_v5 = vpop.f32.mrf.mxu1  ;;  %v2259_v58 = vld [vmem:[%s3664_s19 + $0xf0] sm:$0xff] }
 0x26b   : > { %2315 = vst.msk [vmem:[%s3673_s12 + $0xb0] sm:$0xff] %vm236_vm0, %v2283_v0  ;;  %v2220_v6 = vadd.f32 2.0, %v2180_v1  ;;  %3295 = vlog2.f32 %v2128_v47  ;;  %v1807_v7 = vadd.f32 %v1775_v61, %v1739_v40  ;;  %v2958_v8 = vadd.f32 %v2957_v5, %v2956_v62 }
 0x26c   : > { %v3284_v44 = vpop.eup %3283  ;;  %v2001_v48 = vld [vmem:[#allocation2 + $0xe0] sm:$0xff] }
 0x26d   : > { %v3286_v10 = vpop.eup %3285  ;;  %v2284_v11 = vsub.f32 %v2220_v6, %v2252_v3  ;;  %v2182_v12 = vmul.f32 0.6931472, %v3284_v44  ;;  %v2129_v13 = vsub.f32 %v2001_v48, %v3282_v63  ;;  %1840 = vst.msk [vmem:[#allocation2 + $0xf0] sm:$0xff] %vm236_vm0, %v1807_v7  ;;  %v1742_v14 = vadd.f32 %v2958_v8, %v2846_v4  ;;  %v2260_v63 = vld [vmem:[%s3664_s19 + $0xf8] sm:$0xff] }
 0x26f   : > { %2316 = vst.msk [vmem:[%s3673_s12 + $0xb8] sm:$0xff] %vm236_vm0, %v2284_v11  ;;  %v2221_v16 = vadd.f32 2.0, %v2182_v12  ;;  %3297 = vlog2.f32 %v2129_v13  ;;  %v1808_v17 = vadd.f32 %v1776_v9, %v1742_v14 }
 0x270   : > { %v3288_v18 = vpop.eup %3287  ;;  %v2002_v19 = vld [vmem:[#allocation2 + $0xe8] sm:$0xff] }
 0x271   : > { %v3290_v20 = vpop.eup %3289  ;;  %v2285_v21 = vsub.f32 %v2221_v16, %v2253_v15  ;;  %v2184_v22 = vmul.f32 0.6931472, %v3288_v18  ;;  %v2130_v23 = vsub.f32 %v2002_v19, %v3286_v10  ;;  %1841 = vst.msk [vmem:[#allocation2 + $0xf8] sm:$0xff] %vm236_vm0, %v1808_v17 }
 0x273   : > { %2317 = vst.msk [vmem:[%s3673_s12 + $0xc0] sm:$0xff] %vm236_vm0, %v2285_v21  ;;  %v2222_v25 = vadd.f32 2.0, %v2184_v22  ;;  %3299 = vlog2.f32 %v2130_v23 }
 0x274   : > { %v3292_v45 = vpop.eup %3291  ;;  %v2003_v26 = vld [vmem:[#allocation2 + $0xf0] sm:$0xff] }
 0x275   : > { %v3294_v27 = vpop.eup %3293  ;;  %v2286_v28 = vsub.f32 %v2222_v25, %v2254_v24  ;;  %v2186_v29 = vmul.f32 0.6931472, %v3292_v45  ;;  %v2131_v41 = vsub.f32 %v2003_v26, %v3290_v20 }
 0x277   : > { %2318 = vst.msk [vmem:[%s3673_s12 + $0xc8] sm:$0xff] %vm236_vm0, %v2286_v28  ;;  %v2223_v31 = vadd.f32 2.0, %v2186_v29  ;;  %3301 = vlog2.f32 %v2131_v41 }
 0x278   : > { %v3296_v46 = vpop.eup %3295  ;;  %v2004_v32 = vld [vmem:[#allocation2 + $0xf8] sm:$0xff] }
 0x279   : > { %v2287_v33 = vsub.f32 %v2223_v31, %v2255_v30  ;;  %v2188_v34 = vmul.f32 0.6931472, %v3296_v46  ;;  %v2132_v35 = vsub.f32 %v2004_v32, %v3294_v27 }
 0x27b   : > { %2319 = vst.msk [vmem:[%s3673_s12 + $0xd0] sm:$0xff] %vm236_vm0, %v2287_v33  ;;  %v2224_v37 = vadd.f32 2.0, %v2188_v34  ;;  %3303 = vlog2.f32 %v2132_v35 }
 0x27c   : > { %v3298_v38 = vpop.eup %3297 }
 0x27d   : > { %v2288_v39 = vsub.f32 %v2224_v37, %v2256_v36  ;;  %v2190_v49 = vmul.f32 0.6931472, %v3298_v38 }
 0x27f   : > { %2320 = vst.msk [vmem:[%s3673_s12 + $0xd8] sm:$0xff] %vm236_vm0, %v2288_v39  ;;  %v2225_v51 = vadd.f32 2.0, %v2190_v49 }
 0x280   : > { %v3300_v42 = vpop.eup %3299 }
 0x281   : > { %v2289_v52 = vsub.f32 %v2225_v51, %v2257_v50  ;;  %v2192_v53 = vmul.f32 0.6931472, %v3300_v42 }
 0x283   : > { %2321 = vst.msk [vmem:[%s3673_s12 + $0xe0] sm:$0xff] %vm236_vm0, %v2289_v52  ;;  %v2226_v55 = vadd.f32 2.0, %v2192_v53 }
 0x284   : > { %v3302_v43 = vpop.eup %3301 }
 0x285   : > { %v2290_v56 = vsub.f32 %v2226_v55, %v2258_v54  ;;  %v2194_v57 = vmul.f32 0.6931472, %v3302_v43 }
 0x287   : > { %2322 = vst.msk [vmem:[%s3673_s12 + $0xe8] sm:$0xff] %vm236_vm0, %v2290_v56  ;;  %v2227_v59 = vadd.f32 2.0, %v2194_v57 }
 0x288   : > { %v3304_v60 = vpop.eup %3303 }
 0x289   : > { %v2291_v61 = vsub.f32 %v2227_v59, %v2259_v58  ;;  %v2196_v62 = vmul.f32 0.6931472, %v3304_v60 }
 0x28b   : > { %2323 = vst.msk [vmem:[%s3673_s12 + $0xf0] sm:$0xff] %vm236_vm0, %v2291_v61  ;;  %v2228_v0 = vadd.f32 2.0, %v2196_v62 }
 0x28d   : > { %v2292_v1 = vsub.f32 %v2228_v0, %v2260_v63 }
 0x28f   : > { %2324 = vst.msk [vmem:[%s3673_s12 + $0xf8] sm:$0xff] %vm236_vm0, %v2292_v1 }
 0x290 PF: > { %s13_s14 = sadd.s32 1, %s3327_s14   ;;  %s3808_s12 = smov %s3323_s13 }
 0x291   : > { %p10_p5 = scmp.ge.s32.totalorder %s13_s14, 4   ;;  %s3809_s13 = smov %s3811_s15 }
 0x293   :  { %12 = sbr.rel (!%p10_p5) target bundleno = 2 (0x2), region = 76 }

</bundles_post_ra>
